<compile_context>
chip_gen: v6e
topology: v6e:2x2x1
jax: 0.10.0
libtpu: 0.0.40
codegen_flags: <defaults>
</compile_context>

<pallas_src>
import functools
import math

import numpy as np
import jax
import jax.numpy as jnp
from jax.experimental import pallas as pl
from jax.experimental.pallas import tpu as pltpu


# ------------------------------ tiling helper --------------------------------
def _choose_tm(n, tm=None, min_blocks=2):
    """Pick the row-tile: biggest power-of-two tile (<=2048) dividing n that
    still leaves >= min_blocks grid blocks (v7x has 2 TensorCores and the
    parallel grid axis is what shards across them); fall back to the whole
    array for tiny / awkward n."""
    if tm is None:
        candidates = [t for t in (2048, 1024, 512, 256, 128, 64, 32, 16, 8)
                      if t <= n and n % t == 0]
        tm = n
        for t in candidates:
            if n // t >= min_blocks:
                tm = t
                break
    tm = min(tm, n)
    assert n % tm == 0, f"rows n={n} must be divisible by tile tm={tm}"
    assert tm == n or tm % 8 == 0
    return tm


def _sinusoidal_table(size, scale):
    """(2, size) f32 table: row 0 = [freq*scale, freq*scale], row 1 = phase
    ([0]*half + [pi/2]*half), so cos lanes become sin(a + pi/2)."""
    half = size // 2
    log_factor = math.log(10000.0) / (half - 1)
    freq = jnp.exp(-log_factor * jnp.arange(half, dtype=jnp.float32)) * scale
    freq2 = jnp.concatenate([freq, freq])
    phase2 = jnp.concatenate([jnp.zeros((half,), jnp.float32),
                              jnp.full((half,), jnp.pi / 2, jnp.float32)])
    return jnp.stack([freq2, phase2], axis=0)


# --------------------------- sinusoidal embedding ----------------------------
def _sinusoidal_kernel(x_ref, tab_ref, o_ref):
    # x_ref: (tm, 1) f32; tab_ref: (2, size) f32 resident [freq*scale ; phase];
    # o_ref: (tm, size). Single full-tile sin -- no iota / compare / select.
    ang = x_ref[...] * tab_ref[0:1, :] + tab_ref[1:2, :]
    o_ref[...] = jnp.sin(ang).astype(o_ref.dtype)


@functools.partial(jax.jit, static_argnames=("size", "scale", "tm", "out_dtype"))
def sinusoidal_embedding(x, *, size, scale=1.0, tm=None, out_dtype=jnp.float32):
    """x: (N,) positions/timesteps -> (N, size) sinusoidal embedding."""
    n = x.shape[0]
    assert size % 2 == 0 and size // 2 > 1, "size must be even and >= 4"
    tm = _choose_tm(n, tm)

    tab = _sinusoidal_table(size, scale)                 # (2, size)
    x2 = x.astype(jnp.float32).reshape(n, 1)
    out_bytes = np.dtype(out_dtype).itemsize

    cost = pl.CostEstimate(
        flops=2 * n * size,                              # mul + add
        transcendentals=n * size,                        # one sin per element
        bytes_accessed=4 * (n + 2 * size) + out_bytes * n * size,
    )
    return pl.pallas_call(
        _sinusoidal_kernel,
        out_shape=jax.ShapeDtypeStruct((n, size), out_dtype),
        grid_spec=pltpu.PrefetchScalarGridSpec(
            num_scalar_prefetch=0,
            grid=(n // tm,),
            in_specs=[
                pl.BlockSpec((tm, 1), lambda i: (i, 0)),
                # Constant across the grid: keep the tiny table resident in
                # VMEM instead of double-buffering it every step.
                pl.BlockSpec(memory_space=pltpu.MemorySpace.VMEM),
            ],
            out_specs=pl.BlockSpec((tm, size), lambda i: (i, 0)),
        ),
        compiler_params=pltpu.CompilerParams(dimension_semantics=("parallel",)),
        cost_estimate=cost,
    )(x2, tab)


# ----------------- fused pair (time emb + input emb in one call) -------------
def _sinusoidal_pair_kernel(x_ref, tab_ref, o_ref):
    # x_ref: (1, tm, 1); tab_ref: (1, 2, size) (this segment's freq/phase);
    # o_ref: (1, tm, size).
    ang = x_ref[...] * tab_ref[:, 0:1, :] + tab_ref[:, 1:2, :]
    o_ref[...] = jnp.sin(ang).astype(o_ref.dtype)


@functools.partial(jax.jit,
                   static_argnames=("size", "scale1", "scale2", "tm", "out_dtype"))
def sinusoidal_embedding_pair(x1, x2, *, size, scale1=1.0, scale2=1.0,
                              tm=None, out_dtype=jnp.float32):
    """Two sinusoidal embeddings (different scales) in ONE pallas_call.
    tiny_diffusion computes a time embedding and a coordinate embedding every
    step; fusing them amortizes the launch / per-grid-step overhead that
    dominates at small N."""
    n = x1.shape[0]
    assert x2.shape[0] == n
    assert size % 2 == 0 and size // 2 > 1, "size must be even and >= 4"
    # The segment axis already provides 2 parallel blocks (keeps both v7x TCs
    # busy), so prefer a single big row tile per segment.
    tm = _choose_tm(n, tm, min_blocks=1)

    tab = jnp.stack([_sinusoidal_table(size, scale1),
                     _sinusoidal_table(size, scale2)], axis=0)   # (2, 2, size)
    xs = jnp.stack([x1.astype(jnp.float32),
                    x2.astype(jnp.float32)], axis=0).reshape(2, n, 1)
    out_bytes = np.dtype(out_dtype).itemsize

    cost = pl.CostEstimate(
        flops=2 * 2 * n * size,
        transcendentals=2 * n * size,
        bytes_accessed=4 * (2 * n + 4 * size) + out_bytes * 2 * n * size,
    )
    out = pl.pallas_call(
        _sinusoidal_pair_kernel,
        out_shape=jax.ShapeDtypeStruct((2, n, size), out_dtype),
        grid_spec=pltpu.PrefetchScalarGridSpec(
            num_scalar_prefetch=0,
            grid=(2, n // tm),
            in_specs=[
                pl.BlockSpec((1, tm, 1), lambda s, i: (s, i, 0)),
                pl.BlockSpec((1, 2, size), lambda s, i: (s, 0, 0)),
            ],
            out_specs=pl.BlockSpec((1, tm, size), lambda s, i: (s, i, 0)),
        ),
        compiler_params=pltpu.CompilerParams(
            dimension_semantics=("parallel", "parallel")),
        cost_estimate=cost,
    )(xs, tab)
    return out[0], out[1]


# ---------------------------- learnable embedding ----------------------------
def _learnable_kernel(x_ref, tab_ref, o_ref):
    # nn.Linear(1, size) on (x / size): out[n, j] = x[n] * (w[j]/size) + b[j].
    # tab_ref: (2, size) resident [w/size ; b]; 1/size folded in the wrapper.
    o_ref[...] = (x_ref[...] * tab_ref[0:1, :] + tab_ref[1:2, :]).astype(o_ref.dtype)


@functools.partial(jax.jit, static_argnames=("size", "tm", "out_dtype"))
def learnable_embedding(x, w, b, *, size, tm=None, out_dtype=jnp.float32):
    """x: (N,), w: (size,) = Linear(1,size).weight.squeeze(-1), b: (size,)."""
    n = x.shape[0]
    tm = _choose_tm(n, tm)

    tab = jnp.stack([w.astype(jnp.float32) / float(size),
                     b.astype(jnp.float32)], axis=0)      # (2, size)
    x2 = x.astype(jnp.float32).reshape(n, 1)
    out_bytes = np.dtype(out_dtype).itemsize

    cost = pl.CostEstimate(
        flops=2 * n * size,
        transcendentals=0,
        bytes_accessed=4 * (n + 2 * size) + out_bytes * n * size,
    )
    return pl.pallas_call(
        _learnable_kernel,
        out_shape=jax.ShapeDtypeStruct((n, size), out_dtype),
        grid_spec=pltpu.PrefetchScalarGridSpec(
            num_scalar_prefetch=0,
            grid=(n // tm,),
            in_specs=[
                pl.BlockSpec((tm, 1), lambda i: (i, 0)),
                pl.BlockSpec(memory_space=pltpu.MemorySpace.VMEM),
            ],
            out_specs=pl.BlockSpec((tm, size), lambda i: (i, 0)),
        ),
        compiler_params=pltpu.CompilerParams(dimension_semantics=("parallel",)),
        cost_estimate=cost,
    )(x2, tab)


# ------------------------ PositionalEmbedding dispatch -----------------------
def positional_embedding(x, *, type, size=None, scale=1.0, params=None,
                         tm=None, out_dtype=jnp.float32):
    if type == "sinusoidal":
        return sinusoidal_embedding(x, size=size, scale=scale, tm=tm,
                                    out_dtype=out_dtype)
    if type == "learnable":
        return learnable_embedding(x, params["weight"], params["bias"],
                                   size=size, tm=tm, out_dtype=out_dtype)
    # Pure layout ops (feature dim = 1): a Pallas kernel would only emit
    # lane-masked 1-wide stores; keep them in the wrapper, semantics identical.
    if type == "linear":
        return (x / size * scale)[..., None]
    if type == "identity":
        return x[..., None]
    if type == "zero":
        return x[..., None] * 0
    raise ValueError(f"Unknown positional embedding type: {type}")


# ------------------------------ references -----------------------------------
def sinusoidal_reference(x, size, scale=1.0):
    half = size // 2
    f = math.log(10000.0) / (half - 1)
    freq = jnp.exp(-f * jnp.arange(half, dtype=jnp.float32))
    ang = (x * scale)[:, None] * freq[None, :]
    return jnp.concatenate([jnp.sin(ang), jnp.cos(ang)], axis=-1)


def learnable_reference(x, w, b, size):
    return (x[:, None] / size) * w[None, :] + b[None, :]


if __name__ == "__main__":
    size = 128     # embedding size (lane-dense: multiple of 128)
    n = 256        # rows (flattened batch of timesteps / coordinates)

    key = jax.random.PRNGKey(0)
    kt, kx, kw, kb = jax.random.split(key, 4)

    # diffusion timesteps in [0, 50) and coordinates ~N(0, 1)
    t = jax.random.uniform(kt, (n,), jnp.float32, 0.0, 50.0)
    c = jax.random.normal(kx, (n,), jnp.float32)

    # 'sinusoidal' time embedding (scale=1.0).  Phase-fold adds one f32
    # rounding on arguments up to ~|x*scale| ~ 100, so tolerance is 1e-4.
    out_sin = jax.block_until_ready(
        positional_embedding(t, type="sinusoidal", size=size, scale=1.0))
    ref_sin = sinusoidal_reference(t, size, 1.0)
    assert out_sin.shape == (n, size)
    assert jnp.allclose(out_sin, ref_sin, atol=1e-4, rtol=1e-4), "sinusoidal mismatch"

    # 'sinusoidal' input embedding (scale=25.0, as used in tiny_diffusion)
    out_sin25 = jax.block_until_ready(
        positional_embedding(c, type="sinusoidal", size=size, scale=25.0))
    ref_sin25 = sinusoidal_reference(c, size, 25.0)
    assert jnp.allclose(out_sin25, ref_sin25, atol=1e-4, rtol=1e-4), "sinusoidal(25) mismatch"

    # fused pair: time embedding + coordinate embedding in one pallas_call
    out_t, out_c = sinusoidal_embedding_pair(t, c, size=size,
                                             scale1=1.0, scale2=25.0)
    jax.block_until_ready((out_t, out_c))
    assert jnp.allclose(out_t, ref_sin, atol=1e-4, rtol=1e-4), "pair(time) mismatch"
    assert jnp.allclose(out_c, ref_sin25, atol=1e-4, rtol=1e-4), "pair(coord) mismatch"

    # bf16 output path (compute in f32, cast only at the store)
    out_bf = jax.block_until_ready(
        sinusoidal_embedding(t, size=size, scale=1.0, out_dtype=jnp.bfloat16))
    assert out_bf.dtype == jnp.bfloat16
    assert jnp.allclose(out_bf.astype(jnp.float32), ref_sin, atol=2e-2), "bf16 mismatch"

    # 'learnable': synthetic nn.Linear(1, size) parameters (bound = 1/sqrt(1))
    w = jax.random.uniform(kw, (size,), jnp.float32, -1.0, 1.0)
    b = jax.random.uniform(kb, (size,), jnp.float32, -1.0, 1.0)
    out_ln = jax.block_until_ready(
        positional_embedding(t, type="learnable", size=size,
                             params={"weight": w, "bias": b}))
    ref_ln = learnable_reference(t, w, b, size)
    assert jnp.allclose(out_ln, ref_ln, atol=1e-5, rtol=1e-5), "learnable mismatch"

    # trivial types (wrapper-only layout ops)
    assert jnp.allclose(positional_embedding(t, type="identity"), t[:, None])
    assert jnp.allclose(positional_embedding(t, type="linear", size=size, scale=2.0),
                        (t / size * 2.0)[:, None])
    assert jnp.allclose(positional_embedding(t, type="zero"),
                        jnp.zeros((n, 1), jnp.float32))

    print("KERNEL_OK")
</pallas_src>

<mosaic_0001>
module attributes {stable_mosaic.version = 11 : i64} {
  func.func @_sinusoidal_kernel(%arg0: i32, %arg1: memref<128x1xf32, #tpu.memory_space<vmem>>, %arg2: memref<2x128xf32, #tpu.memory_space<vmem>>, %arg3: memref<128x128xf32, #tpu.memory_space<vmem>>) attributes {dimension_semantics = [#tpu.dimension_semantics<parallel>], iteration_bounds = array<i64: 2>, scalar_prefetch = 0 : i64, scratch_operands = 0 : i64, tpu.core_type = #tpu.core_type<tc>, window_params = [{transform_indices = @transform_0, window_bounds = array<i64: 128, 1>}, {pipeline_mode = #tpu.pipeline_mode<synchronous>, transform_indices = @transform_1, window_bounds = array<i64: 2, 128>}, {transform_indices = @transform_2, window_bounds = array<i64: 128, 128>}]} {
    %c0 = arith.constant 0 : index
    %c0_0 = arith.constant 0 : index
    %0 = vector.load %arg1[%c0, %c0_0] : memref<128x1xf32, #tpu.memory_space<vmem>>, vector<128x1xf32>
    %c0_1 = arith.constant 0 : index
    %c0_2 = arith.constant 0 : index
    %1 = vector.load %arg2[%c0_1, %c0_2] : memref<2x128xf32, #tpu.memory_space<vmem>>, vector<1x128xf32>
    %2 = vector.broadcast %0 : vector<128x1xf32> to vector<128x128xf32>
    %3 = vector.broadcast %1 : vector<1x128xf32> to vector<128x128xf32>
    %4 = arith.mulf %2, %3 : vector<128x128xf32>
    %c1 = arith.constant 1 : index
    %c0_3 = arith.constant 0 : index
    %5 = vector.load %arg2[%c1, %c0_3] : memref<2x128xf32, #tpu.memory_space<vmem>>, vector<1x128xf32>
    %6 = vector.broadcast %5 : vector<1x128xf32> to vector<128x128xf32>
    %7 = arith.addf %4, %6 : vector<128x128xf32>
    %8 = math.sin %7 : vector<128x128xf32>
    %c0_4 = arith.constant 0 : index
    %c0_5 = arith.constant 0 : index
    %9 = vector.load %arg3[%c0_4, %c0_5] : memref<128x128xf32, #tpu.memory_space<vmem>>, vector<128x128xf32>
    tpu.vector_store %arg3[%c0_4, %c0_5], %8 {strides = array<i32>} : memref<128x128xf32, #tpu.memory_space<vmem>>, vector<128x128xf32>,
    return
  }
  func.func @transform_0(%arg0: i32) -> (i32, i32) {
    %c0_i32 = arith.constant 0 : i32
    %c0_i32_0 = arith.constant 0 : i32
    return %arg0, %c0_i32 : i32, i32
  }
  func.func @transform_1(%arg0: i32) -> (i32, i32) {
    %c0_i32 = arith.constant 0 : i32
    %c0_i32_0 = arith.constant 0 : i32
    %c0_i32_1 = arith.constant 0 : i32
    return %c0_i32, %c0_i32_0 : i32, i32
  }
  func.func @transform_2(%arg0: i32) -> (i32, i32) {
    %c0_i32 = arith.constant 0 : i32
    %c0_i32_0 = arith.constant 0 : i32
    return %arg0, %c0_i32 : i32, i32
  }
}

</mosaic_0001>

<bundles_post_ra>
// kernel: sinusoidal_embedding.1
= control target key start
LH: loop header
LB: loop body
LE: loop exit
PB: predicated region body
PF: predicated region fallthrough
CT: control target
= control target key end

     0   :  { %7 = vsyncpa [#allocation3], 0  ;;  %s3664_s0 = inlined_call_operand.vmem [shape: f32[256,1], index: 0, kind: input, shape index: {}]   ;;  %s3665_s1 = inlined_call_operand.vmem [shape: f32[2,128], index: 1, kind: input, shape index: {}]   ;;  %s3666_s2 = inlined_call_operand.hbm [shape: f32[256,128], index: 2, kind: output, shape index: {}]  }
   0x1   :  { %9 = vsyncpa [#allocation3 + $0x1], 0  ;;  %s2387_s9 = smov 0   ;;  %s2389_s10 = smov 0  }
   0x2   :  { %s2391_s11 = smov 0   ;;  %s2393_s12 = smov 0  }
   0x3 LB: > { %s2408_s13 = sadd.s32 4294967295, %s2360_s12   ;;  %s2039_s14 = sadd.s32 4294967294, %s2360_s12   ;;  %s2360_s12 = sphi %s2393_s12, %s3700_s12   ;;  %s2356_s11 = sphi %s2391_s11, %s3699_s11   ;;  %s2352_s10 = sphi %s2389_s10, %s3698_s10   ;;  %s2348_s9 = sphi %s2387_s9, %s3697_s9  }
   0x4   : > { %s2412_s15 = sadd.s32 1, %s2360_s12   ;;  %s69_s16 = sadd.s32 1, %s2356_s11 }
   0x5   : > { %s66_s17 = ssub.s32 %s2360_s12, %s2412_s15  ;;  %p79_p0 = scmp.ne.s32.totalorder %s2356_s11, %s2352_s10 }
   0x6   : > { %p67_p1 = scmp.eq.s32.totalorder %s66_s17, 0  ;;  %p80_p2 = scmp.eq.s32.totalorder %s2408_s13, 1 }
   0x7   : > { %p85_p3 = scmp.ne.s32.totalorder %s2352_s10, %s2348_s9  ;;  %p86_p4 = scmp.eq.s32.totalorder %s2039_s14, 1 }
   0x8   : > { %s2423_s18 = scalar_select %p67_p1, %s2356_s11, %s69_s16  }
   0x9   : > { %p2425_p5 = por %p80_p2, %p79_p0  ;;  %p2429_p6 = por %p86_p4, %p85_p3 }
   0xa   : > { %p2042_p7 = scmp.ge.s32.totalorder %s2360_s12, 1  ;;  %p116_p8 = scmp.lt.s32.totalorder %s2360_s12, 3 }
   0xc   : > { %p117_p9 = pnand %p2042_p7, %p116_p8 }
   0xd   : > { %s2044_s21 = sshll.u32 (!%p117_p9), %s2408_s13, 4  ;;  %s135_s30 = sand.u32 (!%p117_p9), 1, %s2352_s10  }
   0xe   : > { %120 = sbr.rel (%p117_p9) target bundleno = 604 (0x25c), region = 28  ;;  %p139_p10 = scmp.lt.s32.totalorder (!%p117_p9), %s2044_s21, 31 }
   0xf   : > { %s2043_s3 = sshll.u32 (!%p117_p9), %s135_s30, 7  ;;  %s2369_s28 = smov (!%p117_p9), [#allocation2]  }
  0x10   : > { %s2729_s4 = scalar_lea.vmem (!%p117_p9), [#allocation2], %s2043_s3  ;;  %s2304_s29 = sshll.u32 (!%p117_p9), %s2369_s28, 4  ;;  %s2305_s29 = int_to_ptr.vmem [resolvable:$false] %s2304_s29 }
  0x11   : > { %s1977_s23 = sshll.u32 (!%p117_p9), %s2729_s4, 4  ;;  %s2306_s3 = scalar_lea.vmem (!%p117_p9), %s2305_s29, 4096  ;;  %s3618_s23 = int_to_ptr.vmem [resolvable:$true] %s1977_s23 }
  0x12   : > { %s2300_s27 = scalar_lea.vmem (!%p117_p9), %s3618_s23, 2048  ;;  %p2307_p0 = scmp.lt.s32.totalorder (!%p117_p9), %s3618_s23, %s2305_s29 }
  0x13   : > { %v2362_v0 = vmov 0   ;;  %s3702_s21 = smov (!%p139_p10, %s2044_s21), 31  ;;  %v2442_v17 = vld [vmem:[%s3665_s1] ss:$0 sm:$0xff]  ;;  %v2447_v18 = vld [vmem:[%s3665_s1 + $0x1] ss:$0 sm:$0xff]  ;;  %p2301_p11 = scmp.ne.s32.totalorder %s3618_s23, %s2300_s27 }
  0x14   : > { %2231 = vset.pattern.permute.xlu1 %v2362_v0  ;;  %2230 = vset.pattern.permute.xlu0 %v2362_v0  ;;  %s2045_s22 = sshll.u32 %s3702_s21, 3  ;;  %v2363_v56 = vmov 683565275   ;;  %v2364_v60 = vmov 2475754826   ;;  %p2308_p1 = scmp.lt.s32.totalorder %s2306_s3, %s2300_s27 }
  0x15   : > { %s142_s25 = scalar_lea.vmem %s3664_s0, %s2045_s22  ;;  %v2365_v62 = vmov 2131351028   ;;  %v2366_v0 = vmov 2102212464   ;;  %s2117_s22 = sshll.u32 %s2408_s13, 11 }
  0x16   : > { %v147_v1 = vld [vmem:[%s142_s25 + $0x10] sm:$0xff]  ;;  %v145_v2 = vld [vmem:[%s142_s25] sm:$0xff]  ;;  %v148_v3 = vld [vmem:[%s142_s25 + $0x18] sm:$0xff]  ;;  %s3616_s26 = scalar_lea.hbm %s3666_s2, %s2117_s22  ;;  %s3624_s13 = scalar_lea.sflag [#allocation3], %s135_s30 }
  0x17   : > { %174 = vperm.xlu1 %2231, %v147_v1   ;;  %164 = vperm.xlu0 %2230, %v145_v2   ;;  %v146_v4 = vld [vmem:[%s142_s25 + $0x8] sm:$0xff]  ;;  %v149_v6 = vld [vmem:[%s142_s25 + $0x20] sm:$0xff]  ;;  %v152_v7 = vld [vmem:[%s142_s25 + $0x38] sm:$0xff]  ;;  %v2367_v2 = vmov 920167782   ;;  %p2302_p12 = pnand %p2301_p11, %p2425_p5  ;;  %p2309_p2 = por %p2308_p1, %p2307_p0 }
  0x18   : > { %v150_v5 = vld [vmem:[%s142_s25 + $0x28] sm:$0xff]  ;;  %v151_v8 = vld [vmem:[%s142_s25 + $0x30] sm:$0xff]  ;;  %v153_v10 = vld [vmem:[%s142_s25 + $0x40] sm:$0xff] }
  0x19   : > { %v154_v9 = vld [vmem:[%s142_s25 + $0x48] sm:$0xff]  ;;  %v156_v11 = vld [vmem:[%s142_s25 + $0x58] sm:$0xff]  ;;  %v155_v12 = vld [vmem:[%s142_s25 + $0x50] sm:$0xff]  ;;  %p2303_p13 = pneg %p2302_p12 }
  0x1a   : > { %v158_v13 = vld [vmem:[%s142_s25 + $0x68] sm:$0xff]  ;;  %v157_v14 = vld [vmem:[%s142_s25 + $0x60] sm:$0xff]  ;;  %v160_v15 = vld [vmem:[%s142_s25 + $0x78] sm:$0xff] }
  0x1b   : > { %179 = vperm.xlu1 %2231, %v148_v3   ;;  %169 = vperm.xlu0 %2230, %v146_v4   ;;  %v159_v16 = vld [vmem:[%s142_s25 + $0x70] sm:$0xff]  ;;  %p2310_p3 = pnand %p2309_p2, %p2303_p13 }
  0x1f   : > { %189 = vperm.xlu1 %2231, %v150_v5   ;;  %184 = vperm.xlu0 %2230, %v149_v6  }
  0x23   : > { %199 = vperm.xlu1 %2231, %v152_v7   ;;  %194 = vperm.xlu0 %2230, %v151_v8  }
  0x27   : > { %209 = vperm.xlu1 %2231, %v154_v9   ;;  %204 = vperm.xlu0 %2230, %v153_v10   ;;  %v2368_v9 = vmov 1326507024  }
  0x2b   : > { %219 = vperm.xlu1 %2231, %v156_v11   ;;  %214 = vperm.xlu0 %2230, %v155_v12  }
  0x2f   : > { %229 = vperm.xlu1 %2231, %v158_v13   ;;  %224 = vperm.xlu0 %2230, %v157_v14  }
  0x33   : > { %239 = vperm.xlu1 %2231, %v160_v15   ;;  %234 = vperm.xlu0 %2230, %v159_v16  }
  0x92   : > { %v175_v19 = vpop.permute.xlu1 %174  ;;  %v165_v20 = vpop.permute.xlu0 %164 }
  0x93   : > { %v248_v21 = vmul.f32 %v2442_v17, %v175_v19  ;;  %v246_v22 = vmul.f32 %v2442_v17, %v165_v20 }
  0x95   : > { %v2452_v23 = vadd.f32 %v2447_v18, %v248_v21  ;;  %v2455_v24 = vadd.f32 %v2447_v18, %v246_v22 }
  0x96   : > { %v180_v25 = vpop.permute.xlu1 %179  ;;  %v170_v44 = vpop.permute.xlu0 %169 }
  0x97   : > { %v491_v26 = vand.u32 2147483647, %v2452_v23  ;;  %v494_v27 = vand.u32 2139095040, %v2452_v23  ;;  %v283_v28 = vand.u32 2147483647, %v2455_v24  ;;  %v286_v29 = vand.u32 2139095040, %v2455_v24 }
  0x98   : > { %v249_v32 = vmul.f32 %v2442_v17, %v180_v25  ;;  %v2472_v50 = vmul.f32 %v2442_v17, %v170_v44  ;;  %vm493_vm13 = vcmp.lt.s32.totalorder %v2452_v23, 0  ;;  %vm285_vm14 = vcmp.lt.s32.totalorder %v2455_v24, 0 }
  0x99   : > { %v495_v30 = vshrl.u32 %v494_v27, 23  ;;  %v498_v31 = vand.u32 8388607, %v491_v26  ;;  %v287_v33 = vshrl.u32 %v286_v29, 23  ;;  %v290_v34 = vand.u32 8388607, %v283_v28 }
  0x9a   : > { %v2467_v36 = vadd.f32 %v2447_v18, %v249_v32 }
  0x9b   : > { %v2056_v35 = vadd.s32 4294967169, %v495_v30  ;;  %v2048_v37 = vadd.s32 4294967169, %v287_v33  ;;  %v499_v38 = vor.u32 8388608, %v498_v31  ;;  %v291_v40 = vor.u32 8388608, %v290_v34 }
  0x9c   : > { %v595_v42 = vand.u32 2147483647, %v2467_v36  ;;  %v598_v43 = vand.u32 2139095040, %v2467_v36 }
  0x9d   : > { %v501_v39 = vadd.s32 1, %v2056_v35  ;;  %v293_v41 = vadd.s32 1, %v2048_v37  ;;  %v2474_v51 = vshll.u32 %v499_v38, 8  ;;  %v2478_v53 = vshll.u32 %v291_v40, 8 }
  0x9e   : > { %v599_v46 = vshrl.u32 %v598_v43, 23  ;;  %v2482_v54 = vand.u32 8388607, %v595_v42 }
  0x9f   : > { %vm502_vm0 = vcmp.gt.s32.totalorder %v501_v39, 0  ;;  %vm294_vm1 = vcmp.gt.s32.totalorder %v293_v41, 0 }
  0xa0   : > { %v503_v45 = vsel %vm502_vm0, %v501_v39, 0  ;;  %v295_v49 = vsel %vm294_vm1, %v293_v41, 0  ;;  %v2485_v59 = vadd.s32 4294967169, %v599_v46  ;;  %vm2593_vm1 = vcmp.le.f32.partialorder %v491_v26, 0.7853982 }
  0xa1   : > { %v504_v47 = vshrl.u32 %v503_v45, 5  ;;  %v505_v48 = vand.u32 31, %v503_v45  ;;  %v2476_v52 = vshrl.u32 %v295_v49, 5  ;;  %v297_v58 = vand.u32 31, %v295_v49 }
  0xa3   : > { %v506_v55 = vsub.s32 32, %v505_v48  ;;  %v508_v57 = vshll.u32 %v2363_v56, %v505_v48  ;;  %v511_v61 = vshll.u32 %v2364_v60, %v505_v48  ;;  %v514_v63 = vshll.u32 %v2365_v62, %v505_v48 }
  0xa4   : > { %v517_v1 = vshll.u32 %v2366_v0, %v505_v48  ;;  %v520_v3 = vshll.u32 %v2367_v2, %v505_v48  ;;  %vm523_vm2 = vcmp.lt.s32.totalorder %v504_v47, 1  ;;  %vm524_vm3 = vcmp.lt.s32.totalorder %v504_v47, 2 }
  0xa5   : > { %v509_v4 = vshrl.u32 %v2364_v60, %v506_v55  ;;  %v512_v5 = vshrl.u32 %v2365_v62, %v506_v55  ;;  %v515_v6 = vshrl.u32 %v2366_v0, %v506_v55  ;;  %v507_v7 = vshrl.u32 %v2363_v56, %v506_v55 }
  0xa6   : > { %v518_v8 = vshrl.u32 %v2367_v2, %v506_v55  ;;  %v521_v10 = vshrl.u32 %v2368_v9, %v506_v55  ;;  %v298_v14 = vsub.s32 32, %v297_v58  ;;  %vm525_vm4 = vcmp.lt.s32.totalorder %v504_v47, 3 }
  0xa7   : > { %v510_v11 = vor.u32 %v509_v4, %v508_v57  ;;  %v513_v12 = vor.u32 %v512_v5, %v511_v61  ;;  %v516_v13 = vor.u32 %v515_v6, %v514_v63  ;;  %vm526_vm5 = vcmp.lt.s32.totalorder %v504_v47, 4 }
  0xa8   : > { %v519_v15 = vor.u32 %v518_v8, %v517_v1  ;;  %v522_v16 = vor.u32 %v521_v10, %v520_v3  ;;  %v300_v30 = vshll.u32 %v2363_v56, %v297_v58  ;;  %v301_v33 = vshrl.u32 %v2364_v60, %v298_v14 }
  0xa9   : > { %v527_v19 = vsel %vm523_vm2, %v507_v7, %v510_v11  ;;  %v528_v20 = vsel %vm526_vm5, %v516_v13, 2102212464  ;;  %v531_v21 = vsel %vm523_vm2, %v510_v11, %v513_v12  ;;  %v535_v22 = vsel %vm523_vm2, %v513_v12, %v516_v13 }
  0xaa   : > { %v529_v25 = vsel %vm525_vm4, %v513_v12, %v528_v20  ;;  %v532_v27 = vsel %vm526_vm5, %v519_v15, 920167782  ;;  %v536_v29 = vsel %vm526_vm5, %v522_v16, 1326507024  ;;  %v303_v34 = vshll.u32 %v2364_v60, %v297_v58 }
  0xab   : > { %v533_v31 = vsel %vm525_vm4, %v516_v13, %v532_v27  ;;  %v537_v32 = vsel %vm525_vm4, %v519_v15, %v536_v29  ;;  %v530_v35 = vsel %vm524_vm3, %v527_v19, %v529_v25  ;;  %v304_v39 = vshrl.u32 %v2365_v62, %v298_v14 }
  0xac   : > { %v534_v37 = vsel %vm524_vm3, %v531_v21, %v533_v31  ;;  %v538_v38 = vsel %vm524_vm3, %v535_v22, %v537_v32  ;;  %v302_v45 = vor.u32 %v301_v33, %v300_v30  ;;  %v306_v48 = vshll.u32 %v2365_v62, %v297_v58 }
  0xad   : > { %v2508_v40 = vmul.u32.u64.low %v2474_v51, %v538_v38  ;;  %v2509_v41 = vmul.u32.u64.high %v2474_v51, %v538_v38, %v2508_v40  ;;  %v2512_v43 = vmul.u32.u64.low %v2474_v51, %v534_v37  ;;  %v2513_v44 = vmul.u32.u64.high %v2474_v51, %v534_v37, %v2512_v43 }
  0xae   : > { %v305_v46 = vor.u32 %v304_v39, %v303_v34  ;;  %v307_v49 = vshrl.u32 %v2366_v0, %v298_v14  ;;  %v299_v55 = vshrl.u32 %v2363_v56, %v298_v14  ;;  %v309_v47 = vshll.u32 %v2366_v0, %v297_v58 }
  0xaf   : > { %v310_v57 = vshrl.u32 %v2367_v2, %v298_v14  ;;  %v313_v61 = vshrl.u32 %v2368_v9, %v298_v14  ;;  %v546_v63 = vmul.u32 %v2474_v51, %v530_v35  ;;  %v312_v3 = vshll.u32 %v2367_v2, %v297_v58 }
  0xb0   : > { %v308_v1 = vor.u32 %v307_v49, %v306_v48  ;;  %vm315_vm6 = vcmp.lt.s32.totalorder %v2476_v52, 1  ;;  %vm548_vm7 = vc.u32 %v2509_v41, %v2512_v43  ;;  %v549_v4 = vadd.s32 1, %v2513_v44 }
  0xb1   : > { %v311_v5 = vor.u32 %v310_v57, %v309_v47  ;;  %vm316_vm8 = vcmp.lt.s32.totalorder %v2476_v52, 2  ;;  %v314_v6 = vor.u32 %v313_v61, %v312_v3  ;;  %vm317_vm9 = vcmp.lt.s32.totalorder %v2476_v52, 3 }
  0xb2   : > { %vm318_vm10 = vcmp.lt.s32.totalorder %v2476_v52, 4  ;;  %v323_v7 = vsel %vm315_vm6, %v302_v45, %v305_v46  ;;  %v550_v51 = vsel %vm548_vm7, %v549_v4, %v2513_v44  ;;  %v327_v58 = vsel %vm315_vm6, %v305_v46, %v308_v1 }
  0xb3   : > { %v320_v8 = vsel %vm318_vm10, %v308_v1, 2102212464  ;;  %v324_v10 = vsel %vm318_vm10, %v311_v5, 920167782  ;;  %v551_v11 = vadd.s32 %v550_v51, %v546_v63  ;;  %v319_v12 = vsel %vm315_vm6, %v299_v55, %v302_v45 }
  0xb4   : > { %v325_v13 = vsel %vm317_vm9, %v308_v1, %v324_v10  ;;  %v328_v14 = vsel %vm318_vm10, %v314_v6, 1326507024  ;;  %v321_v15 = vsel %vm317_vm9, %v305_v46, %v320_v8  ;;  %v605_v20 = vadd.s32 1, %v2485_v59 }
  0xb5   : > { %v326_v16 = vsel %vm316_vm8, %v323_v7, %v325_v13  ;;  %v329_v19 = vsel %vm317_vm9, %v311_v5, %v328_v14  ;;  %v552_v21 = vadd.s32 536870912, %v551_v11  ;;  %v322_v32 = vsel %vm316_vm8, %v319_v12, %v321_v15 }
  0xb6   : > { %v330_v22 = vsel %vm316_vm8, %v327_v58, %v329_v19  ;;  %v2536_v25 = vmul.u32.u64.low %v2478_v53, %v326_v16  ;;  %v2537_v27 = vmul.u32.u64.high %v2478_v53, %v326_v16, %v2536_v25  ;;  %vm606_vm11 = vcmp.gt.s32.totalorder %v605_v20, 0 }
  0xb7   : > { %v2541_v29 = vmul.u32.u64.low %v2478_v53, %v330_v22  ;;  %v2542_v30 = vmul.u32.u64.high %v2478_v53, %v330_v22, %v2541_v29  ;;  %v553_v31 = vshrl.u32 %v552_v21, 30  ;;  %v607_v33 = vsel %vm606_vm11, %v605_v20, 0 }
  0xb8   : > { %v2548_v59 = vadd.f32 %v2447_v18, %v2472_v50  ;;  %v609_v34 = vand.u32 31, %v607_v33  ;;  %v341_v37 = vadd.s32 1, %v2537_v27  ;;  %v603_v38 = vor.u32 8388608, %v2482_v54 }
  0xb9   : > { %v554_v35 = vshll.u32 %v553_v31, 30  ;;  %v338_v39 = vmul.u32 %v2478_v53, %v322_v32  ;;  %vm340_vm12 = vc.u32 %v2542_v30, %v2536_v25  ;;  %v547_v46 = vadd.s32 %v2512_v43, %v2509_v41 }
  0xba   : > { %v610_v40 = vsub.s32 32, %v609_v34  ;;  %v342_v52 = vsel %vm340_vm12, %v341_v37, %v2537_v27  ;;  %v387_v45 = vand.u32 2147483647, %v2548_v59  ;;  %v2562_v54 = vshll.u32 %v603_v38, 8 }
  0xbb   : > { %v2555_v44 = vsub.s32 %v551_v11, %v554_v35  ;;  %v343_v50 = vadd.s32 %v342_v52, %v338_v39  ;;  %v2564_v49 = vshrl.u32 %v607_v33, 5  ;;  %v390_v47 = vand.u32 2139095040, %v2548_v59 }
  0xbc   : > { %v613_v55 = vshrl.u32 %v2364_v60, %v610_v40  ;;  %v616_v61 = vshrl.u32 %v2365_v62, %v610_v40  ;;  %v619_v63 = vshrl.u32 %v2366_v0, %v610_v40  ;;  %v2573_v41 = vand.u32 8388607, %v387_v45 }
  0xbd   : > { %v557_v48 = vsub.s32 0, %v2555_v44  ;;  %v344_v53 = vadd.s32 536870912, %v343_v50  ;;  %v577_v43 = vsub.s32 4, %v553_v31  ;;  %v612_v3 = vshll.u32 %v2363_v56, %v609_v34 }
  0xbe   : > { %v622_v4 = vshrl.u32 %v2367_v2, %v610_v40  ;;  %v615_v6 = vshll.u32 %v2364_v60, %v609_v34  ;;  %v618_v7 = vshll.u32 %v2365_v62, %v609_v34  ;;  %v625_v51 = vshrl.u32 %v2368_v9, %v610_v40 }
  0xbf   : > { %v2057_v57 = vmin.u32 %v557_v48, %v2555_v44  ;;  %v345_v1 = vshrl.u32 %v344_v53, 30  ;;  %v614_v10 = vor.u32 %v613_v55, %v612_v3  ;;  %v621_v58 = vshll.u32 %v2366_v0, %v609_v34 }
  0xc0   : > { %v391_v11 = vshrl.u32 %v390_v47, 23  ;;  %v617_v13 = vor.u32 %v616_v61, %v615_v6  ;;  %v620_v14 = vor.u32 %v619_v63, %v618_v7  ;;  %v624_v15 = vshll.u32 %v2367_v2, %v609_v34 }
  0xc1   : > { %v559_v5 = vclz %v2057_v57  ;;  %v346_v8 = vshll.u32 %v345_v1, 30  ;;  %v2584_v16 = vsel %vm493_vm13, %v577_v43, %v553_v31  ;;  %v611_v20 = vshrl.u32 %v2363_v56, %v610_v40 }
  0xc2   : > { %v623_v21 = vor.u32 %v622_v4, %v621_v58  ;;  %v369_v22 = vsub.s32 4, %v345_v1  ;;  %v626_v27 = vor.u32 %v625_v51, %v624_v15  ;;  %vm627_vm0 = vcmp.lt.s32.totalorder %v2564_v49, 1 }
  0xc3   : > { %v2058_v12 = vadd.s32 4294967294, %v559_v5  ;;  %v2587_v19 = vsub.s32 %v343_v50, %v346_v8  ;;  %vm629_vm2 = vcmp.lt.s32.totalorder %v2564_v49, 3  ;;  %vm630_vm3 = vcmp.lt.s32.totalorder %v2564_v49, 4 }
  0xc4   : > { %vm2602_vm4 = vcmp.le.f32.partialorder %v283_v28, 0.7853982  ;;  %v632_v37 = vsel %vm630_vm3, %v620_v14, 2102212464  ;;  %v635_v26 = vsel %vm627_vm0, %v614_v10, %v617_v13  ;;  %v636_v40 = vsel %vm630_vm3, %v623_v21, 920167782 }
  0xc5   : > { %vm2059_vm15 = vcmp.lt.s32.totalorder %v2058_v12, 0  ;;  %v349_v32 = vsub.s32 0, %v2587_v19  ;;  %v639_v52 = vsel %vm627_vm0, %v617_v13, %v620_v14  ;;  %v637_v28 = vsel %vm629_vm2, %v620_v14, %v636_v40 }
  0xc6   : > { %v562_v31 = vsel %vm2059_vm15, 0, %v2058_v12  ;;  %v640_v53 = vsel %vm630_vm3, %v626_v27, 1326507024  ;;  %vm628_vm5 = vcmp.lt.s32.totalorder %v2564_v49, 2  ;;  %v631_v47 = vsel %vm627_vm0, %v611_v20, %v614_v10  ;;  %v190_v27 = vpop.permute.xlu1 %189 }
  0xc7   : > { %v563_v33 = vsub.s32 32, %v562_v31  ;;  %v567_v34 = vsub.s32 4294967266, %v562_v31  ;;  %v564_v38 = vshll.u32 %v2555_v44, %v562_v31  ;;  %v2049_v39 = vmin.u32 %v349_v32, %v2587_v19 }
  0xc8   : > { %v633_v44 = vsel %vm629_vm2, %v617_v13, %v632_v37  ;;  %v638_v63 = vsel %vm628_vm5, %v635_v26, %v637_v28  ;;  %v370_v7 = vsel %vm285_vm14, %v369_v22, %v345_v1  ;;  %v339_v10 = vadd.s32 %v2536_v25, %v2542_v30 }
  0xc9   : > { %v565_v50 = vshrl.u32 %v547_v46, %v563_v33  ;;  %v568_v48 = vadd.s32 127, %v567_v34  ;;  %v351_v55 = vclz %v2049_v39  ;;  %v641_v46 = vsel %vm629_vm2, %v623_v21, %v640_v53 }
  0xca   : > { %v642_v3 = vsel %vm628_vm5, %v639_v52, %v641_v46  ;;  %v2622_v4 = vmul.u32.u64.low %v2562_v54, %v638_v63  ;;  %v2623_v5 = vmul.u32.u64.high %v2562_v54, %v638_v63, %v2622_v4  ;;  %v634_v49 = vsel %vm628_vm5, %v631_v47, %v633_v44 }
  0xcb   : > { %v566_v57 = vor.u32 %v565_v50, %v564_v38  ;;  %v569_v61 = vshll.u32 %v568_v48, 23  ;;  %v2050_v43 = vadd.s32 4294967294, %v351_v55  ;;  %v2052_v58 = vadd.s32 4294967169, %v391_v11  ;;  %v185_v50 = vpop.permute.xlu0 %184 }
  0xcc   : > { %v2628_v51 = vmul.u32.u64.low %v2562_v54, %v642_v3  ;;  %v2629_v8 = vmul.u32.u64.high %v2562_v54, %v642_v3, %v2628_v51  ;;  %v580_v14 = vsel %vm2593_vm1, 0, %v2584_v16  ;;  %v372_v1 = vsel %vm2602_vm4, 0, %v370_v7 }
  0xcd   : > { %v570_v6 = vor.u32 4788187, %v569_v61  ;;  %vm2051_vm6 = vcmp.lt.s32.totalorder %v2050_v43, 0  ;;  %v573_v13 = vcvt.s32.f32 %v566_v57  ;;  %v653_v22 = vadd.s32 1, %v2623_v5 }
  0xce   : > { %v354_v15 = vsel %vm2051_vm6, 0, %v2050_v43  ;;  %v650_v25 = vmul.u32 %v2562_v54, %v634_v49  ;;  %vm652_vm7 = vc.u32 %v2629_v8, %v2622_v4  ;;  %v397_v30 = vadd.s32 1, %v2052_v58 }
  0xcf   : > { %v571_v12 = vand.u32 2147483647, %v570_v6  ;;  %v355_v20 = vsub.s32 32, %v354_v15  ;;  %v359_v21 = vsub.s32 4294967266, %v354_v15  ;;  %v356_v11 = vshll.u32 %v2587_v19, %v354_v15 }
  0xd0   : > { %v654_v16 = vsel %vm652_vm7, %v653_v22, %v2623_v5  ;;  %vm398_vm8 = vcmp.gt.s32.totalorder %v397_v30, 0  ;;  %v251_v26 = vmul.f32 %v2442_v17, %v190_v27  ;;  %v584_v38 = vadd.s32 3, %v580_v14 }
  0xd1   : > { %v574_v31 = vmul.f32 %v573_v13, %v571_v12  ;;  %v357_v32 = vshrl.u32 %v339_v10, %v355_v20  ;;  %v360_v33 = vadd.s32 127, %v359_v21  ;;  %v655_v37 = vadd.s32 %v654_v16, %v650_v25 }
  0xd2   : > { %v399_v52 = vsel %vm398_vm8, %v397_v30, 0  ;;  %v376_v48 = vadd.s32 3, %v372_v1  ;;  %v395_v47 = vor.u32 8388608, %v2573_v41  ;;  %v2651_v61 = vmul.f32 %v2442_v17, %v185_v50 }
  0xd3   : > { %v575_v34 = vxor.u32 2147483648, %v574_v31  ;;  %v358_v39 = vor.u32 %v357_v32, %v356_v11  ;;  %v361_v40 = vshll.u32 %v360_v33, 23  ;;  %v656_v28 = vadd.s32 536870912, %v655_v37 }
  0xd4   : > { %v401_v19 = vand.u32 31, %v399_v52  ;;  %v2653_v63 = vand.u32 3, %v584_v38  ;;  %vm597_vm9 = vcmp.lt.s32.totalorder %v2467_v36, 0  ;;  %v2656_v3 = vand.u32 3, %v376_v48 }
  0xd5   : > { %v576_v54 = vsel %vm493_vm13, %v575_v34, %v574_v31  ;;  %v362_v55 = vor.u32 4788187, %v361_v40  ;;  %v657_v44 = vshrl.u32 %v656_v28, 30  ;;  %v365_v43 = vcvt.s32.f32 %v358_v39 }
  0xd6   : > { %v579_v53 = vsel %vm2593_vm1, %v2452_v23, %v576_v54  ;;  %v402_v57 = vsub.s32 32, %v401_v19  ;;  %v2659_v29 = vadd.s32 %v2622_v4, %v2629_v8  ;;  %v2662_v41 = vadd.f32 %v2447_v18, %v251_v26 }
  0xd7   : > { %2232 = vcosq.f32 %v579_v53  ;;  %v363_v46 = vand.u32 2147483647, %v362_v55  ;;  %v658_v5 = vshll.u32 %v657_v44, 30  ;;  %v410_v7 = vshll.u32 %v2365_v62, %v401_v19 }
  0xd8   : > { %2234 = vsinq.f32 %v579_v53  ;;  %v411_v51 = vshrl.u32 %v2366_v0, %v402_v57  ;;  %v2666_v10 = vshll.u32 %v395_v47, 8  ;;  %v405_v58 = vshrl.u32 %v2364_v60, %v402_v57 }
  0xd9   : > { %v366_v6 = vmul.f32 %v365_v43, %v363_v46  ;;  %v2668_v49 = vsub.s32 %v655_v37, %v658_v5  ;;  %v408_v12 = vshrl.u32 %v2365_v62, %v402_v57  ;;  %v414_v4 = vshrl.u32 %v2367_v2, %v402_v57 }
  0xda   : > { %v2673_v13 = vshrl.u32 %v399_v52, 5  ;;  %v404_v14 = vshll.u32 %v2363_v56, %v401_v19  ;;  %v413_v15 = vshll.u32 %v2366_v0, %v401_v19  ;;  %v681_v21 = vsub.s32 4, %v657_v44 }
  0xdb   : > { %v367_v8 = vxor.u32 2147483648, %v366_v6  ;;  %v661_v20 = vsub.s32 0, %v2668_v49  ;;  %v407_v1 = vshll.u32 %v2364_v60, %v401_v19  ;;  %v412_v22 = vor.u32 %v411_v51, %v410_v7 }
  0xdc   : > { %vm590_vm10 = vcmp.eq.s32.totalorder %v2653_v63, 2  ;;  %v415_v31 = vor.u32 %v414_v4, %v413_v15  ;;  %v416_v25 = vshll.u32 %v2367_v2, %v401_v19  ;;  %v417_v30 = vshrl.u32 %v2368_v9, %v402_v57 }
  0xdd   : > { %v368_v27 = vsel %vm285_vm14, %v367_v8, %v366_v6  ;;  %vm587_vm11 = vcmp.eq.s32.totalorder %v2653_v63, 0  ;;  %v2061_v32 = vmin.u32 %v661_v20, %v2668_v49  ;;  %v406_v33 = vor.u32 %v405_v58, %v404_v14 }
  0xde   : > { %v371_v11 = vsel %vm2602_vm4, %v2455_v24, %v368_v27  ;;  %v409_v16 = vor.u32 %v408_v12, %v407_v1  ;;  %vm586_vm12 = vcmp.lt.s32.totalorder %v2653_v63, 2  ;;  %v403_v34 = vshrl.u32 %v2363_v56, %v402_v57 }
  0xdf   : > { %2236 = vcosq.f32 %v371_v11  ;;  %v418_v37 = vor.u32 %v417_v30, %v416_v25  ;;  %v803_v26 = vand.u32 2147483647, %v2662_v41  ;;  %vm583_vm13 = vweird.f32 %v2452_v23 }
  0xe0   : > { %2238 = vsinq.f32 %v371_v11  ;;  %v663_v38 = vclz %v2061_v32  ;;  %v2696_v35 = vsel %vm597_vm9, %v681_v21, %v657_v44  ;;  %vm422_vm14 = vcmp.lt.s32.totalorder %v2673_v13, 4 }
  0xe1   : > { %vm419_vm15 = vcmp.lt.s32.totalorder %v2673_v13, 1  ;;  %vm420_vm0 = vcmp.lt.s32.totalorder %v2673_v13, 2  ;;  %v424_v39 = vsel %vm422_vm14, %v412_v22, 2102212464  ;;  %v428_v40 = vsel %vm422_vm14, %v415_v31, 920167782 }
  0xe2   : > { %v2062_v52 = vadd.s32 4294967294, %v663_v38  ;;  %vm421_vm1 = vcmp.lt.s32.totalorder %v2673_v13, 3  ;;  %v423_v50 = vsel %vm419_vm15, %v403_v34, %v406_v33  ;;  %v431_v54 = vsel %vm419_vm15, %v409_v16, %v412_v22 }
  0xe3   : > { %v427_v28 = vsel %vm419_vm15, %v406_v33, %v409_v16  ;;  %v429_v19 = vsel %vm421_vm1, %v412_v22, %v428_v40  ;;  %v432_v53 = vsel %vm422_vm14, %v418_v37, 1326507024  ;;  %v806_v55 = vand.u32 2139095040, %v2662_v41 }
  0xe4   : > { %v2233_v48 = vpop.eup %2232  ;;  %vm2063_vm2 = vcmp.lt.s32.totalorder %v2062_v52, 0  ;;  %v425_v57 = vsel %vm421_vm1, %v409_v16, %v424_v39  ;;  %v433_v46 = vsel %vm421_vm1, %v415_v31, %v432_v53  ;;  %v430_v4 = vsel %vm420_vm0, %v427_v28, %v429_v19 }
  0xe5   : > { %v2235_v47 = vpop.eup %2234  ;;  %v591_v44 = vxor.u32 2147483648, %v2233_v48  ;;  %v666_v5 = vsel %vm2063_vm2, 0, %v2062_v52  ;;  %v434_v6 = vsel %vm420_vm0, %v431_v54, %v433_v46  ;;  %v807_v7 = vshrl.u32 %v806_v55, 23 }
  0xe6   : > { %v588_v43 = vxor.u32 2147483648, %v2235_v47  ;;  %v667_v58 = vsub.s32 32, %v666_v5  ;;  %v671_v12 = vsub.s32 4294967266, %v666_v5  ;;  %v668_v1 = vshll.u32 %v2668_v49, %v666_v5 }
  0xe7   : > { %v592_v51 = vsel %vm590_vm10, %v591_v44, %v2235_v47  ;;  %v2714_v14 = vmul.u32.u64.low %v2666_v10, %v434_v6  ;;  %v2715_v15 = vmul.u32.u64.high %v2666_v10, %v434_v6, %v2714_v14  ;;  %v2068_v20 = vadd.s32 4294967169, %v807_v7 }
  0xe8   : > { %v589_v8 = vsel %vm587_vm11, %v2233_v48, %v588_v43  ;;  %v669_v22 = vshrl.u32 %v2659_v29, %v667_v58  ;;  %v672_v27 = vadd.s32 127, %v671_v12  ;;  %vm375_vm3 = vweird.f32 %v2455_v24 }
  0xe9   : > { %v593_v21 = vsel %vm586_vm12, %v589_v8, %v592_v51  ;;  %v2725_v25 = vmul.u32.u64.low %v2666_v10, %v430_v4  ;;  %v2726_v30 = vmul.u32.u64.high %v2666_v10, %v430_v4, %v2725_v25  ;;  %v813_v11 = vadd.s32 1, %v2068_v20 }
  0xea   : > { %v594_v31 = vsel %vm583_vm13, nan, %v593_v21  ;;  %vm378_vm4 = vcmp.lt.s32.totalorder %v2656_v3, 2  ;;  %vm2735_vm5 = vcmp.le.f32.partialorder %v595_v42, 0.7853982  ;;  %v670_v23 = vor.u32 %v669_v22, %v668_v1 }
  0xeb   : > { %1949 = vst [vmem:[%s2729_s4 + $0x10] sm:$0xff] %v594_v31  ;;  %v673_v29 = vshll.u32 %v672_v27, 23  ;;  %vm379_vm6 = vcmp.eq.s32.totalorder %v2656_v3, 0  ;;  %v684_v49 = vsel %vm2735_vm5, 0, %v2696_v35  ;;  %v426_v32 = vsel %vm420_vm0, %v423_v50, %v425_v57 }
  0xec   : > { %vm814_vm7 = vcmp.gt.s32.totalorder %v813_v11, 0  ;;  %v2237_v33 = vpop.eup %2236  ;;  %vm444_vm8 = vc.u32 %v2715_v15, %v2725_v25  ;;  %v810_v42 = vand.u32 8388607, %v803_v26  ;;  %vm382_vm10 = vcmp.eq.s32.totalorder %v2656_v3, 2 }
  0xed   : > { %v674_v16 = vor.u32 4788187, %v673_v29  ;;  %v815_v34 = vsel %vm814_vm7, %v813_v11, 0  ;;  %v2239_v37 = vpop.eup %2238  ;;  %v383_v38 = vxor.u32 2147483648, %v2237_v33  ;;  %v445_v39 = vadd.s32 1, %v2726_v30 }
  0xee   : > { %v817_v35 = vand.u32 31, %v815_v34  ;;  %v380_v40 = vxor.u32 2147483648, %v2239_v37  ;;  %v677_v52 = vcvt.s32.f32 %v670_v23  ;;  %v442_v50 = vmul.u32 %v2666_v10, %v426_v32 }
  0xef   : > { %v675_v13 = vand.u32 2147483647, %v674_v16  ;;  %v384_v54 = vsel %vm382_vm10, %v383_v38, %v2239_v37  ;;  %v688_v48 = vadd.s32 3, %v684_v49  ;;  %v446_v28 = vsel %vm444_vm8, %v445_v39, %v2726_v30 }
  0xf0   : > { %v818_v19 = vsub.s32 32, %v817_v35  ;;  %v381_v53 = vsel %vm379_vm6, %v2237_v33, %v380_v40  ;;  %v447_v47 = vadd.s32 %v446_v28, %v442_v50  ;;  %v811_v44 = vor.u32 8388608, %v810_v42 }
  0xf1   : > { %v678_v55 = vmul.f32 %v677_v52, %v675_v13  ;;  %v385_v57 = vsel %vm378_vm4, %v381_v53, %v384_v54  ;;  %v820_v46 = vshll.u32 %v2363_v56, %v817_v35  ;;  %v816_v51 = vshrl.u32 %v815_v34, 5 }
  0xf2   : > { %v821_v43 = vshrl.u32 %v2364_v60, %v818_v19  ;;  %v824_v10 = vshrl.u32 %v2365_v62, %v818_v19  ;;  %v386_v5 = vsel %vm375_vm3, nan, %v385_v57  ;;  %v448_v7 = vadd.s32 536870912, %v447_v47 }
  0xf3   : > { %v679_v6 = vxor.u32 2147483648, %v678_v55  ;;  %1947 = vst [vmem:[%s2729_s4] sm:$0xff] %v386_v5  ;;  %v823_v12 = vshll.u32 %v2364_v60, %v817_v35  ;;  %v826_v4 = vshll.u32 %v2365_v62, %v817_v35  ;;  %v827_v3 = vshrl.u32 %v2366_v0, %v818_v19 }
  0xf4   : > { %v822_v58 = vor.u32 %v821_v43, %v820_v46  ;;  %v449_v14 = vshrl.u32 %v448_v7, 30  ;;  %v829_v20 = vshll.u32 %v2366_v0, %v817_v35  ;;  %v830_v24 = vshrl.u32 %v2367_v2, %v818_v19 }
  0xf5   : > { %v680_v8 = vsel %vm597_vm9, %v679_v6, %v678_v55  ;;  %v825_v1 = vor.u32 %v824_v10, %v823_v12  ;;  %v832_v22 = vshll.u32 %v2367_v2, %v817_v35  ;;  %v833_v27 = vshrl.u32 %v2368_v9, %v818_v19 }
  0xf6   : > { %v683_v21 = vsel %vm2735_vm5, %v2467_v36, %v680_v8  ;;  %v450_v31 = vshll.u32 %v449_v14, 30  ;;  %v828_v30 = vor.u32 %v827_v3, %v826_v4  ;;  %v831_v11 = vor.u32 %v830_v24, %v829_v20 }
  0xf7   : > { %2240 = vcosq.f32 %v683_v21  ;;  %v834_v23 = vor.u32 %v833_v27, %v832_v22  ;;  %vm835_vm9 = vcmp.lt.s32.totalorder %v816_v51, 1  ;;  %vm838_vm11 = vcmp.lt.s32.totalorder %v816_v51, 4 }
  0xf8   : > { %2242 = vsinq.f32 %v683_v21  ;;  %v2775_v29 = vsub.s32 %v447_v47, %v450_v31  ;;  %v2779_v49 = vadd.f32 %v2447_v18, %v2651_v61  ;;  %v2781_v63 = vand.u32 3, %v688_v48 }
  0xf9   : > { %vm837_vm12 = vcmp.lt.s32.totalorder %v816_v51, 3  ;;  %v843_v32 = vsel %vm835_vm9, %v822_v58, %v825_v1  ;;  %v844_v33 = vsel %vm838_vm11, %v831_v11, 920167782  ;;  %vm836_vm13 = vcmp.lt.s32.totalorder %v816_v51, 2 }
  0xfa   : > { %v453_v16 = vsub.s32 0, %v2775_v29  ;;  %v845_v42 = vsel %vm837_vm12, %v828_v30, %v844_v33  ;;  %v851_v34 = vshll.u32 %v811_v44, 8  ;;  %v840_v37 = vsel %vm838_vm11, %v828_v30, 2102212464 }
  0xfb   : > { %v846_v38 = vsel %vm836_vm13, %v843_v32, %v845_v42  ;;  %v847_v39 = vsel %vm835_vm9, %v825_v1, %v828_v30  ;;  %v848_v35 = vsel %vm838_vm11, %v834_v23, 1326507024  ;;  %v473_v40 = vsub.s32 4, %v449_v14 }
  0xfc   : > { %v2053_v61 = vmin.u32 %v453_v16, %v2775_v29  ;;  %v819_v13 = vshrl.u32 %v2363_v56, %v818_v19  ;;  %v849_v52 = vsel %vm837_vm12, %v831_v11, %v848_v35  ;;  %v702_v28 = vand.u32 2139095040, %v2779_v49  ;;  %v200_v11 = vpop.permute.xlu1 %199 }
  0xfd   : > { %v850_v50 = vsel %vm836_vm13, %v847_v39, %v849_v52  ;;  %v2792_v54 = vmul.u32.u64.low %v851_v34, %v846_v38  ;;  %v2793_v48 = vmul.u32.u64.high %v851_v34, %v846_v38, %v2792_v54  ;;  %v841_v47 = vsel %vm837_vm12, %v825_v1, %v840_v37 }
  0xfe   : > { %v455_v53 = vclz %v2053_v61  ;;  %v839_v55 = vsel %vm835_vm9, %v819_v13, %v822_v58  ;;  %vm389_vm14 = vcmp.lt.s32.totalorder %v2548_v59, 0  ;;  %v703_v19 = vshrl.u32 %v702_v28, 23 }
  0xff   : > { %v2800_v44 = vmul.u32.u64.low %v851_v34, %v850_v50  ;;  %v2801_v57 = vmul.u32.u64.high %v851_v34, %v850_v50, %v2800_v44  ;;  %vm687_vm15 = vweird.f32 %v2467_v36  ;;  %vm690_vm0 = vcmp.lt.s32.totalorder %v2781_v63, 2 }
 0x100   : > { %vm2807_vm1 = vcmp.le.f32.partialorder %v387_v45, 0.7853982  ;;  %v2054_v43 = vadd.s32 4294967294, %v455_v53  ;;  %v474_v10 = vsel %vm389_vm14, %v473_v40, %v449_v14  ;;  %vm691_vm2 = vcmp.eq.s32.totalorder %v2781_v63, 0 }
 0x101   : > { %v842_v5 = vsel %vm836_vm13, %v839_v55, %v841_v47  ;;  %v861_v6 = vadd.s32 1, %v2793_v48  ;;  %v2064_v7 = vadd.s32 4294967169, %v703_v19  ;;  %vm694_vm3 = vcmp.eq.s32.totalorder %v2781_v63, 2 }
 0x102   : > { %v443_v58 = vadd.s32 %v2725_v25, %v2715_v15  ;;  %vm2055_vm4 = vcmp.lt.s32.totalorder %v2054_v43, 0  ;;  %v699_v45 = vand.u32 2147483647, %v2779_v49  ;;  %v476_v3 = vsel %vm2807_vm1, 0, %v474_v10 }
 0x103   : > { %v458_v4 = vsel %vm2055_vm4, 0, %v2054_v43  ;;  %vm860_vm5 = vc.u32 %v2801_v57, %v2792_v54  ;;  %v709_v51 = vadd.s32 1, %v2064_v7  ;;  %v858_v21 = vmul.u32 %v851_v34, %v842_v5 }
 0x104   : > { %v2241_v12 = vpop.eup %2240  ;;  %v459_v20 = vsub.s32 32, %v458_v4  ;;  %v463_v24 = vsub.s32 4294967266, %v458_v4  ;;  %v460_v15 = vshll.u32 %v2775_v29, %v458_v4  ;;  %v862_v25 = vsel %vm860_vm5, %v861_v6, %v2793_v48 }
 0x105   : > { %v2243_v8 = vpop.eup %2242  ;;  %v695_v14 = vxor.u32 2147483648, %v2241_v12  ;;  %vm710_vm6 = vcmp.gt.s32.totalorder %v709_v51, 0  ;;  %v863_v30 = vadd.s32 %v862_v25, %v858_v21  ;;  %v480_v32 = vadd.s32 3, %v476_v3 }
 0x106   : > { %v692_v1 = vxor.u32 2147483648, %v2243_v8  ;;  %v461_v27 = vshrl.u32 %v443_v58, %v459_v20  ;;  %v464_v31 = vadd.s32 127, %v463_v24  ;;  %v706_v33 = vand.u32 8388607, %v699_v45 }
 0x107   : > { %v696_v22 = vsel %vm694_vm3, %v695_v14, %v2243_v8  ;;  %v711_v16 = vsel %vm710_vm6, %v709_v51, 0  ;;  %v864_v37 = vadd.s32 536870912, %v863_v30  ;;  %v253_v35 = vmul.f32 %v2442_v17, %v200_v11 }
 0x108   : > { %v693_v23 = vsel %vm691_vm2, %v2241_v12, %v692_v1  ;;  %v462_v42 = vor.u32 %v461_v27, %v460_v15  ;;  %v465_v34 = vshll.u32 %v464_v31, 23  ;;  %v713_v39 = vand.u32 31, %v711_v16 }
 0x109   : > { %v697_v29 = vsel %vm690_vm0, %v693_v23, %v696_v22  ;;  %v2838_v40 = vshrl.u32 %v864_v37, 30  ;;  %v707_v13 = vor.u32 8388608, %v706_v33  ;;  %v2840_v28 = vand.u32 3, %v480_v32 }
 0x10a   : > { %v698_v38 = vsel %vm687_vm15, nan, %v697_v29  ;;  %v466_v61 = vor.u32 4788187, %v465_v34  ;;  %v714_v52 = vsub.s32 32, %v713_v39  ;;  %v469_v48 = vcvt.s32.f32 %v462_v42 }
 0x10b   : > { %1950 = vst [vmem:[%s2729_s4 + $0x18] sm:$0xff] %v698_v38  ;;  %v866_v63 = vshll.u32 %v2838_v40, 30  ;;  %v2847_v17 = vadd.f32 %v2447_v18, %v253_v35  ;;  %v716_v19 = vshll.u32 %v2363_v56, %v713_v39  ;;  %v712_v10 = vshrl.u32 %v711_v16, 5 }
 0x10c   : > { %v467_v50 = vand.u32 2147483647, %v466_v61  ;;  %v717_v53 = vshrl.u32 %v2364_v60, %v714_v52  ;;  %v720_v36 = vshrl.u32 %v2365_v62, %v714_v52  ;;  %v723_v55 = vshrl.u32 %v2366_v0, %v714_v52 }
 0x10d   : > { %v2849_v44 = vsub.s32 %v863_v30, %v866_v63  ;;  %v726_v43 = vshrl.u32 %v2367_v2, %v714_v52  ;;  %v719_v5 = vshll.u32 %v2364_v60, %v713_v39  ;;  %v722_v6 = vshll.u32 %v2365_v62, %v713_v39 }
 0x10e   : > { %v470_v47 = vmul.f32 %v469_v48, %v467_v50  ;;  %v2855_v7 = vshll.u32 %v707_v13, 8  ;;  %v718_v4 = vor.u32 %v717_v53, %v716_v19  ;;  %v725_v18 = vshll.u32 %v2366_v0, %v713_v39  ;;  %v195_v19 = vpop.permute.xlu0 %194 }
 0x10f   : > { %v869_v12 = vsub.s32 0, %v2849_v44  ;;  %v721_v3 = vor.u32 %v720_v36, %v719_v5  ;;  %v724_v51 = vor.u32 %v723_v55, %v722_v6  ;;  %v728_v8 = vshll.u32 %v2367_v2, %v713_v39 }
 0x110   : > { %v471_v58 = vxor.u32 2147483648, %v470_v47  ;;  %v729_v14 = vshrl.u32 %v2368_v9, %v714_v52  ;;  %v727_v21 = vor.u32 %v726_v43, %v725_v18  ;;  %v1014_v1 = vand.u32 2139095040, %v2847_v17 }
 0x111   : > { %v2069_v24 = vmin.u32 %v869_v12, %v2849_v44  ;;  %v889_v25 = vsub.s32 4, %v2838_v40  ;;  %v715_v22 = vshrl.u32 %v2363_v56, %v714_v52  ;;  %vm805_vm7 = vcmp.lt.s32.totalorder %v2662_v41, 0 }
 0x112   : > { %v472_v20 = vsel %vm389_vm14, %v471_v58, %v470_v47  ;;  %v730_v27 = vor.u32 %v729_v14, %v728_v8  ;;  %vm731_vm8 = vcmp.lt.s32.totalorder %v712_v10, 1  ;;  %vm734_vm10 = vcmp.lt.s32.totalorder %v712_v10, 4 }
 0x113   : > { %v475_v15 = vsel %vm2807_vm1, %v2548_v59, %v472_v20  ;;  %v871_v31 = vclz %v2069_v24  ;;  %vm732_vm9 = vcmp.lt.s32.totalorder %v712_v10, 2  ;;  %v736_v30 = vsel %vm734_vm10, %v724_v51, 2102212464 }
 0x114   : > { %2244 = vcosq.f32 %v475_v15  ;;  %v739_v11 = vsel %vm731_vm8, %v718_v4, %v721_v3  ;;  %vm733_vm11 = vcmp.lt.s32.totalorder %v712_v10, 3  ;;  %v740_v32 = vsel %vm734_vm10, %v727_v21, 920167782 }
 0x115   : > { %2246 = vsinq.f32 %v475_v15  ;;  %v2070_v23 = vadd.s32 4294967294, %v871_v31  ;;  %v743_v46 = vsel %vm731_vm8, %v721_v3, %v724_v51  ;;  %v735_v33 = vsel %vm731_vm8, %v715_v22, %v718_v4  ;;  %v2918_v22 = vld [vmem:[%s3665_s1 + $0x1] ss:$0 sm:$0xff] }
 0x116   : > { %v741_v16 = vsel %vm733_vm11, %v724_v51, %v740_v32  ;;  %v744_v29 = vsel %vm734_vm10, %v730_v27, 1326507024  ;;  %v1015_v42 = vshrl.u32 %v1014_v1, 23  ;;  %v737_v34 = vsel %vm733_vm11, %v721_v3, %v736_v30 }
 0x117   : > { %vm2071_vm12 = vcmp.lt.s32.totalorder %v2070_v23, 0  ;;  %v742_v37 = vsel %vm732_vm9, %v739_v11, %v741_v16  ;;  %v745_v38 = vsel %vm733_vm11, %v727_v21, %v744_v29  ;;  %v859_v52 = vadd.s32 %v2792_v54, %v2801_v57 }
 0x118   : > { %v874_v39 = vsel %vm2071_vm12, 0, %v2070_v23  ;;  %v746_v35 = vsel %vm732_vm9, %v743_v46, %v745_v38  ;;  %v2874_v61 = vmul.u32.u64.low %v2855_v7, %v742_v37  ;;  %v2875_v13 = vmul.u32.u64.high %v2855_v7, %v742_v37, %v2874_v61 }
 0x119   : > { %v875_v50 = vsub.s32 32, %v874_v39  ;;  %v879_v48 = vsub.s32 4294967266, %v874_v39  ;;  %v2076_v63 = vadd.s32 4294967169, %v1015_v42  ;;  %v738_v53 = vsel %vm732_vm9, %v735_v33, %v737_v34 }
 0x11a   : > { %v2882_v36 = vmul.u32.u64.low %v2855_v7, %v746_v35  ;;  %v2883_v55 = vmul.u32.u64.high %v2855_v7, %v746_v35, %v2882_v36  ;;  %v1011_v47 = vand.u32 2147483647, %v2847_v17  ;;  %v876_v43 = vshll.u32 %v2849_v44, %v874_v39  ;;  %v2901_v44 = vld [vmem:[%s3665_s1] ss:$0 sm:$0xff] }
 0x11b   : > { %v877_v5 = vshrl.u32 %v859_v52, %v875_v50  ;;  %v880_v6 = vadd.s32 127, %v879_v48  ;;  %v1021_v58 = vadd.s32 1, %v2076_v63  ;;  %vm2889_vm13 = vcmp.le.f32.partialorder %v803_v26, 0.7853982 }
 0x11c   : > { %v890_v57 = vsel %vm805_vm7, %v889_v25, %v2838_v40  ;;  %v757_v10 = vadd.s32 1, %v2875_v13  ;;  %vm479_vm14 = vweird.f32 %v2548_v59  ;;  %v252_v26 = vmul.f32 %v2901_v44, %v195_v19 }
 0x11d   : > { %v878_v12 = vor.u32 %v877_v5, %v876_v43  ;;  %v881_v4 = vshll.u32 %v880_v6, 23  ;;  %vm1022_vm15 = vcmp.gt.s32.totalorder %v1021_v58, 0  ;;  %vm482_vm0 = vcmp.lt.s32.totalorder %v2840_v28, 2 }
 0x11e   : > { %v754_v18 = vmul.u32 %v2855_v7, %v738_v53  ;;  %vm756_vm1 = vc.u32 %v2883_v55, %v2874_v61  ;;  %v1023_v40 = vsel %vm1022_vm15, %v1021_v58, 0  ;;  %v892_v51 = vsel %vm2889_vm13, 0, %v890_v57 }
 0x11f   : > { %v882_v3 = vor.u32 4788187, %v881_v4  ;;  %v758_v8 = vsel %vm756_vm1, %v757_v10, %v2875_v13  ;;  %v1018_v14 = vand.u32 8388607, %v1011_v47  ;;  %vm483_vm2 = vcmp.eq.s32.totalorder %v2840_v28, 0 }
 0x120   : > { %vm486_vm3 = vcmp.eq.s32.totalorder %v2840_v28, 2  ;;  %v759_v24 = vadd.s32 %v758_v8, %v754_v18  ;;  %v1025_v7 = vand.u32 31, %v1023_v40  ;;  %v885_v25 = vcvt.s32.f32 %v878_v12 }
 0x121   : > { %v2245_v20 = vpop.eup %2244  ;;  %v883_v15 = vand.u32 2147483647, %v882_v3  ;;  %v2921_v27 = vadd.f32 %v2918_v22, %v252_v26  ;;  %v896_v30 = vadd.s32 3, %v892_v51  ;;  %v1019_v33 = vor.u32 8388608, %v1018_v14 }
 0x122   : > { %v2247_v21 = vpop.eup %2246  ;;  %v487_v1 = vxor.u32 2147483648, %v2245_v20  ;;  %v760_v11 = vadd.s32 536870912, %v759_v24  ;;  %v1026_v23 = vsub.s32 32, %v1025_v7  ;;  %v1028_v16 = vshll.u32 %v2363_v56, %v1025_v7 }
 0x123   : > { %v484_v31 = vxor.u32 2147483648, %v2247_v21  ;;  %v886_v46 = vmul.f32 %v885_v25, %v883_v15  ;;  %v1034_v37 = vshll.u32 %v2365_v62, %v1025_v7  ;;  %v1024_v48 = vshrl.u32 %v1023_v40, 5 }
 0x124   : > { %v488_v32 = vsel %vm486_vm3, %v487_v1, %v2247_v21  ;;  %v2926_v42 = vshrl.u32 %v760_v11, 30  ;;  %v1029_v34 = vshrl.u32 %v2364_v60, %v1026_v23  ;;  %v1032_v35 = vshrl.u32 %v2365_v62, %v1026_v23 }
 0x125   : > { %v485_v29 = vsel %vm483_vm2, %v2245_v20, %v484_v31  ;;  %v887_v39 = vxor.u32 2147483648, %v886_v46  ;;  %v1035_v13 = vshrl.u32 %v2366_v0, %v1026_v23  ;;  %v910_v63 = vand.u32 2139095040, %v2921_v27 }
 0x126   : > { %v489_v38 = vsel %vm482_vm0, %v485_v29, %v488_v32  ;;  %v762_v50 = vshll.u32 %v2926_v42, 30  ;;  %v1030_v36 = vor.u32 %v1029_v34, %v1028_v16  ;;  %v1031_v28 = vshll.u32 %v2364_v60, %v1025_v7 }
 0x127   : > { %v490_v52 = vsel %vm479_vm14, nan, %v489_v38  ;;  %v888_v53 = vsel %vm805_vm7, %v887_v39, %v886_v46  ;;  %v1036_v19 = vor.u32 %v1035_v13, %v1034_v37  ;;  %v1037_v59 = vshll.u32 %v2366_v0, %v1025_v7 }
 0x128   : > { %1948 = vst [vmem:[%s2729_s4 + $0x8] sm:$0xff] %v490_v52  ;;  %v891_v43 = vsel %vm2889_vm13, %v2662_v41, %v888_v53  ;;  %v2945_v5 = vsub.s32 %v759_v24, %v762_v50  ;;  %v1038_v6 = vshrl.u32 %v2367_v2, %v1026_v23  ;;  %v1033_v58 = vor.u32 %v1032_v35, %v1031_v28 }
 0x129   : > { %2248 = vcosq.f32 %v891_v43  ;;  %v1040_v57 = vshll.u32 %v2367_v2, %v1025_v7  ;;  %v1041_v10 = vshrl.u32 %v2368_v9, %v1026_v23  ;;  %v2951_v12 = vand.u32 3, %v896_v30 }
 0x12a   : > { %2250 = vsinq.f32 %v891_v43  ;;  %v765_v4 = vsub.s32 0, %v2945_v5  ;;  %v1039_v26 = vor.u32 %v1038_v6, %v1037_v59  ;;  %vm1046_vm4 = vcmp.lt.s32.totalorder %v1024_v48, 4 }
 0x12b   : > { %v1042_v54 = vor.u32 %v1041_v10, %v1040_v57  ;;  %v1059_v18 = vshll.u32 %v1019_v33, 8  ;;  %v911_v40 = vshrl.u32 %v910_v63, 23  ;;  %v1027_v51 = vshrl.u32 %v2363_v56, %v1026_v23 }
 0x12c   : > { %v2065_v3 = vmin.u32 %v765_v4, %v2945_v5  ;;  %vm1043_vm5 = vcmp.lt.s32.totalorder %v1024_v48, 1  ;;  %v1048_v8 = vsel %vm1046_vm4, %v1036_v19, 2102212464  ;;  %v1052_v20 = vsel %vm1046_vm4, %v1039_v26, 920167782 }
 0x12d   : > { %v1051_v14 = vsel %vm1043_vm5, %v1030_v36, %v1033_v58  ;;  %v1055_v24 = vsel %vm1043_vm5, %v1033_v58, %v1036_v19  ;;  %v1056_v7 = vsel %vm1046_vm4, %v1042_v54, 1326507024  ;;  %vm1044_vm6 = vcmp.lt.s32.totalorder %v1024_v48, 2 }
 0x12e   : > { %v767_v21 = vclz %v2065_v3  ;;  %vm1045_vm7 = vcmp.lt.s32.totalorder %v1024_v48, 3  ;;  %v1047_v1 = vsel %vm1043_vm5, %v1027_v51, %v1030_v36  ;;  %v2072_v30 = vadd.s32 4294967169, %v911_v40 }
 0x12f   : > { %v1049_v15 = vsel %vm1045_vm7, %v1033_v58, %v1048_v8  ;;  %v1053_v25 = vsel %vm1045_vm7, %v1036_v19, %v1052_v20  ;;  %v1057_v31 = vsel %vm1045_vm7, %v1039_v26, %v1056_v7  ;;  %vm701_vm8 = vcmp.lt.s32.totalorder %v2779_v49, 0 }
 0x130   : > { %v2066_v11 = vadd.s32 4294967294, %v767_v21  ;;  %v1054_v32 = vsel %vm1044_vm6, %v1051_v14, %v1053_v25  ;;  %v1058_v46 = vsel %vm1044_vm6, %v1055_v24, %v1057_v31  ;;  %v1050_v34 = vsel %vm1044_vm6, %v1047_v1, %v1049_v15 }
 0x131   : > { %v2956_v33 = vmul.u32.u64.low %v1059_v18, %v1058_v46  ;;  %v2957_v16 = vmul.u32.u64.high %v1059_v18, %v1058_v46, %v2956_v33  ;;  %v2959_v23 = vmul.u32.u64.low %v1059_v18, %v1054_v32  ;;  %v2960_v29 = vmul.u32.u64.high %v1059_v18, %v1054_v32, %v2959_v23 }
 0x132   : > { %vm2067_vm10 = vcmp.lt.s32.totalorder %v2066_v11, 0  ;;  %v917_v37 = vadd.s32 1, %v2072_v30  ;;  %vm895_vm9 = vweird.f32 %v2662_v41  ;;  %vm902_vm11 = vcmp.eq.s32.totalorder %v2951_v12, 2 }
 0x133   : > { %v770_v38 = vsel %vm2067_vm10, 0, %v2066_v11  ;;  %v785_v39 = vsub.s32 4, %v2926_v42  ;;  %v907_v35 = vand.u32 2147483647, %v2921_v27  ;;  %v755_v13 = vadd.s32 %v2874_v61, %v2883_v55  ;;  %v205_v11 = vpop.permute.xlu0 %204 }
 0x134   : > { %v771_v52 = vsub.s32 32, %v770_v38  ;;  %v775_v50 = vsub.s32 4294967266, %v770_v38  ;;  %vm918_vm12 = vcmp.gt.s32.totalorder %v917_v37, 0  ;;  %v1066_v48 = vmul.u32 %v1059_v18, %v1050_v34  ;;  %v210_v18 = vpop.permute.xlu1 %209 }
 0x135   : > { %vm1068_vm13 = vc.u32 %v2957_v16, %v2959_v23  ;;  %v1069_v63 = vadd.s32 1, %v2960_v29  ;;  %v919_v53 = vsel %vm918_vm12, %v917_v37, 0  ;;  %v772_v28 = vshll.u32 %v2945_v5, %v770_v38 }
 0x136   : > { %v2249_v36 = vpop.eup %2248  ;;  %v773_v19 = vshrl.u32 %v755_v13, %v771_v52  ;;  %v776_v43 = vadd.s32 127, %v775_v50  ;;  %v921_v59 = vand.u32 31, %v919_v53  ;;  %v786_v61 = vsel %vm701_vm8, %v785_v39, %v2926_v42 }
 0x137   : > { %v2251_v6 = vpop.eup %2250  ;;  %v903_v58 = vxor.u32 2147483648, %v2249_v36  ;;  %v1070_v55 = vsel %vm1068_vm13, %v1069_v63, %v2960_v29  ;;  %v914_v57 = vand.u32 8388607, %v907_v35  ;;  %vm899_vm14 = vcmp.eq.s32.totalorder %v2951_v12, 0 }
 0x138   : > { %v900_v10 = vxor.u32 2147483648, %v2251_v6  ;;  %v774_v4 = vor.u32 %v773_v19, %v772_v28  ;;  %v777_v26 = vshll.u32 %v776_v43, 23  ;;  %v1071_v54 = vadd.s32 %v1070_v55, %v1066_v48 }
 0x139   : > { %v904_v5 = vsel %vm902_vm11, %v903_v58, %v2251_v6  ;;  %vm2985_vm15 = vcmp.le.f32.partialorder %v699_v45, 0.7853982  ;;  %v922_v40 = vsub.s32 32, %v921_v59  ;;  %vm898_vm0 = vcmp.lt.s32.totalorder %v2951_v12, 2 }
 0x13a   : > { %v901_v3 = vsel %vm899_vm14, %v2249_v36, %v900_v10  ;;  %v778_v51 = vor.u32 4788187, %v777_v26  ;;  %v1072_v8 = vadd.s32 536870912, %v1071_v54  ;;  %v788_v20 = vsel %vm2985_vm15, 0, %v786_v61 }
 0x13b   : > { %v905_v14 = vsel %vm898_vm0, %v901_v3, %v904_v5  ;;  %v915_v24 = vor.u32 8388608, %v914_v57  ;;  %v255_v7 = vmul.f32 %v2901_v44, %v210_v18  ;;  %v781_v1 = vcvt.s32.f32 %v774_v4 }
 0x13c   : > { %v906_v21 = vsel %vm895_vm9, nan, %v905_v14  ;;  %v779_v45 = vand.u32 2147483647, %v778_v51  ;;  %v2995_v15 = vshrl.u32 %v1072_v8, 30  ;;  %v920_v25 = vshrl.u32 %v919_v53, 5 }
 0x13d   : > { %1952 = vst [vmem:[%s2729_s4 + $0x28] sm:$0xff] %v906_v21  ;;  %v925_v12 = vshrl.u32 %v2364_v60, %v922_v40  ;;  %v928_v31 = vshrl.u32 %v2365_v62, %v922_v40  ;;  %v931_v30 = vshrl.u32 %v2366_v0, %v922_v40  ;;  %v930_v33 = vshll.u32 %v2365_v62, %v921_v59 }
 0x13e   : > { %v782_v32 = vmul.f32 %v781_v1, %v779_v45  ;;  %v1074_v46 = vshll.u32 %v2995_v15, 30  ;;  %v934_v41 = vshrl.u32 %v2367_v2, %v922_v40  ;;  %v924_v29 = vshll.u32 %v2363_v56, %v921_v59 }
 0x13f   : > { %v927_v34 = vshll.u32 %v2364_v60, %v921_v59  ;;  %v933_v37 = vshll.u32 %v2366_v0, %v921_v59  ;;  %v937_v38 = vshrl.u32 %v2368_v9, %v922_v40  ;;  %v932_v52 = vor.u32 %v931_v30, %v930_v33 }
 0x140   : > { %v783_v39 = vxor.u32 2147483648, %v782_v32  ;;  %v3008_v13 = vsub.s32 %v1071_v54, %v1074_v46  ;;  %v254_v50 = vmul.f32 %v2901_v44, %v205_v11  ;;  %v926_v48 = vor.u32 %v925_v12, %v924_v29 }
 0x141   : > { %v929_v63 = vor.u32 %v928_v31, %v927_v34  ;;  %v935_v53 = vor.u32 %v934_v41, %v933_v37  ;;  %v936_v36 = vshll.u32 %v2367_v2, %v921_v59  ;;  %v792_v19 = vadd.s32 3, %v788_v20 }
 0x142   : > { %v784_v28 = vsel %vm701_vm8, %v783_v39, %v782_v32  ;;  %v1077_v43 = vsub.s32 0, %v3008_v13  ;;  %v3016_v6 = vadd.f32 %v2918_v22, %v255_v7  ;;  %vm1013_vm1 = vcmp.lt.s32.totalorder %v2847_v17, 0 }
 0x143   : > { %v787_v58 = vsel %vm2985_vm15, %v2779_v49, %v784_v28  ;;  %v938_v61 = vor.u32 %v937_v38, %v936_v36  ;;  %vm942_vm2 = vcmp.lt.s32.totalorder %v920_v25, 4  ;;  %v955_v55 = vshll.u32 %v915_v24, 8 }
 0x144   : > { %2252 = vcosq.f32 %v787_v58  ;;  %v2077_v59 = vmin.u32 %v1077_v43, %v3008_v13  ;;  %vm939_vm3 = vcmp.lt.s32.totalorder %v920_v25, 1  ;;  %v944_v57 = vsel %vm942_vm2, %v932_v52, 2102212464 }
 0x145   : > { %2254 = vsinq.f32 %v787_v58  ;;  %v923_v10 = vshrl.u32 %v2363_v56, %v922_v40  ;;  %v947_v4 = vsel %vm939_vm3, %v926_v48, %v929_v63  ;;  %v948_v26 = vsel %vm942_vm2, %v935_v53, 920167782 }
 0x146   : > { %vm3028_vm4 = vcmp.le.f32.partialorder %v1011_v47, 0.7853982  ;;  %v1079_v18 = vclz %v2077_v59  ;;  %vm940_vm5 = vcmp.lt.s32.totalorder %v920_v25, 2  ;;  %vm941_vm6 = vcmp.lt.s32.totalorder %v920_v25, 3  ;;  %v220_v59 = vpop.permute.xlu1 %219 }
 0x147   : > { %v951_v5 = vsel %vm939_vm3, %v929_v63, %v932_v52  ;;  %v943_v42 = vsel %vm939_vm3, %v923_v10, %v926_v48  ;;  %v945_v3 = vsel %vm941_vm6, %v929_v63, %v944_v57  ;;  %v949_v51 = vsel %vm941_vm6, %v932_v52, %v948_v26 }
 0x148   : > { %v952_v8 = vsel %vm942_vm2, %v938_v61, 1326507024  ;;  %v2078_v14 = vadd.s32 4294967294, %v1079_v18  ;;  %v1097_v40 = vsub.s32 4, %v2995_v15  ;;  %v950_v20 = vsel %vm940_vm5, %v947_v4, %v949_v51 }
 0x149   : > { %v953_v24 = vsel %vm941_vm6, %v935_v53, %v952_v8  ;;  %v3034_v21 = vmul.u32.u64.low %v955_v55, %v950_v20  ;;  %v3035_v47 = vmul.u32.u64.high %v955_v55, %v950_v20, %v3034_v21  ;;  %v1222_v45 = vand.u32 2139095040, %v3016_v6 }
 0x14a   : > { %v954_v7 = vsel %vm940_vm5, %v951_v5, %v953_v24  ;;  %vm2079_vm7 = vcmp.lt.s32.totalorder %v2078_v14, 0  ;;  %v946_v1 = vsel %vm940_vm5, %v943_v42, %v945_v3  ;;  %v793_v30 = vand.u32 3, %v792_v19 }
 0x14b   : > { %v3039_v12 = vmul.u32.u64.low %v955_v55, %v954_v7  ;;  %v3040_v31 = vmul.u32.u64.high %v955_v55, %v954_v7, %v3039_v12  ;;  %v1082_v25 = vsel %vm2079_vm7, 0, %v2078_v14  ;;  %v1223_v11 = vshrl.u32 %v1222_v45, 23 }
 0x14c   : > { %v3043_v32 = vadd.f32 %v2918_v22, %v254_v50  ;;  %v1067_v46 = vadd.s32 %v2959_v23, %v2957_v16  ;;  %v1083_v33 = vsub.s32 32, %v1082_v25  ;;  %v1087_v41 = vsub.s32 4294967266, %v1082_v25 }
 0x14d   : > { %v1098_v29 = vsel %vm1013_vm1, %v1097_v40, %v2995_v15  ;;  %v962_v34 = vmul.u32 %v955_v55, %v946_v1  ;;  %v965_v37 = vadd.s32 1, %v3035_v47  ;;  %v1219_v38 = vand.u32 2147483647, %v3016_v6 }
 0x14e   : > { %v2084_v39 = vadd.s32 4294967169, %v1223_v11  ;;  %v1084_v52 = vshll.u32 %v3008_v13, %v1082_v25  ;;  %v1085_v48 = vshrl.u32 %v1067_v46, %v1083_v33  ;;  %v1088_v50 = vadd.s32 127, %v1087_v41 }
 0x14f   : > { %vm964_vm8 = vc.u32 %v3040_v31, %v3034_v21  ;;  %v1100_v16 = vsel %vm3028_vm4, 0, %v1098_v29  ;;  %v1118_v15 = vand.u32 2139095040, %v3043_v32  ;;  %vm791_vm10 = vweird.f32 %v2779_v49 }
 0x150   : > { %v966_v23 = vsel %vm964_vm8, %v965_v37, %v3035_v47  ;;  %v1229_v63 = vadd.s32 1, %v2084_v39  ;;  %v1086_v53 = vor.u32 %v1085_v48, %v1084_v52  ;;  %v1089_v36 = vshll.u32 %v1088_v50, 23 }
 0x151   : > { %v967_v28 = vadd.s32 %v966_v23, %v962_v34  ;;  %v2253_v19 = vpop.eup %2252  ;;  %vm795_vm9 = vcmp.eq.s32.totalorder %v793_v30, 0  ;;  %vm798_vm11 = vcmp.eq.s32.totalorder %v793_v30, 2  ;;  %v1104_v61 = vadd.s32 3, %v1100_v16 }
 0x152   : > { %vm1230_vm12 = vcmp.gt.s32.totalorder %v1229_v63, 0  ;;  %v2255_v13 = vpop.eup %2254  ;;  %v799_v43 = vxor.u32 2147483648, %v2253_v19  ;;  %v1090_v58 = vor.u32 4788187, %v1089_v36  ;;  %v1226_v10 = vand.u32 8388607, %v1219_v38 }
 0x153   : > { %v968_v55 = vadd.s32 536870912, %v967_v28  ;;  %v796_v57 = vxor.u32 2147483648, %v2255_v13  ;;  %v1231_v4 = vsel %vm1230_vm12, %v1229_v63, 0  ;;  %v1119_v26 = vshrl.u32 %v1118_v15, 23 }
 0x154   : > { %v800_v18 = vsel %vm798_vm11, %v799_v43, %v2255_v13  ;;  %v1091_v5 = vand.u32 2147483647, %v1090_v58  ;;  %v1093_v42 = vcvt.s32.f32 %v1086_v53  ;;  %vm794_vm13 = vcmp.lt.s32.totalorder %v793_v30, 2 }
 0x155   : > { %v969_v3 = vshrl.u32 %v968_v55, 30  ;;  %v797_v51 = vsel %vm795_vm9, %v2253_v19, %v796_v57  ;;  %v1233_v8 = vand.u32 31, %v1231_v4  ;;  %v3064_v14 = vmul.f32 %v2901_v44, %v220_v59 }
 0x156   : > { %v801_v40 = vsel %vm794_vm13, %v797_v51, %v800_v18  ;;  %v1094_v20 = vmul.f32 %v1093_v42, %v1091_v5  ;;  %v3066_v24 = vand.u32 3, %v1104_v61  ;;  %vm909_vm14 = vcmp.lt.s32.totalorder %v2921_v27, 0 }
 0x157   : > { %v970_v7 = vshll.u32 %v969_v3, 30  ;;  %v802_v47 = vsel %vm791_vm10, nan, %v801_v40  ;;  %v1227_v45 = vor.u32 8388608, %v1226_v10  ;;  %v1234_v1 = vsub.s32 32, %v1233_v8 }
 0x158   : > { %v1115_v12 = vand.u32 2147483647, %v3043_v32  ;;  %1951 = vst [vmem:[%s2729_s4 + $0x20] sm:$0xff] %v802_v47  ;;  %v1095_v30 = vxor.u32 2147483648, %v1094_v20  ;;  %v1232_v11 = vshrl.u32 %v1231_v4, 5  ;;  %v2080_v46 = vadd.s32 4294967169, %v1119_v26 }
 0x159   : > { %v3073_v25 = vsub.s32 %v967_v28, %v970_v7  ;;  %v1236_v33 = vshll.u32 %v2363_v56, %v1233_v8  ;;  %v1237_v41 = vshrl.u32 %v2364_v60, %v1234_v1  ;;  %v1239_v29 = vshll.u32 %v2364_v60, %v1233_v8 }
 0x15a   : > { %v1240_v34 = vshrl.u32 %v2365_v62, %v1234_v1  ;;  %v1096_v49 = vsel %vm1013_vm1, %v1095_v30, %v1094_v20  ;;  %v1242_v39 = vshll.u32 %v2365_v62, %v1233_v8  ;;  %v1243_v52 = vshrl.u32 %v2366_v0, %v1234_v1 }
 0x15b   : > { %v973_v37 = vsub.s32 0, %v3073_v25  ;;  %v1099_v48 = vsel %vm3028_vm4, %v2847_v17, %v1096_v49  ;;  %v993_v50 = vsub.s32 4, %v969_v3  ;;  %v1238_v16 = vor.u32 %v1237_v41, %v1236_v33 }
 0x15c   : > { %v1241_v23 = vor.u32 %v1240_v34, %v1239_v29  ;;  %2256 = vcosq.f32 %v1099_v48  ;;  %v1244_v15 = vor.u32 %v1243_v52, %v1242_v39  ;;  %v1245_v53 = vshll.u32 %v2366_v0, %v1233_v8 }
 0x15d   : > { %v2073_v63 = vmin.u32 %v973_v37, %v3073_v25  ;;  %2258 = vsinq.f32 %v1099_v48  ;;  %v1246_v36 = vshrl.u32 %v2367_v2, %v1234_v1  ;;  %v1248_v28 = vshll.u32 %v2367_v2, %v1233_v8 }
 0x15e   : > { %v1249_v19 = vshrl.u32 %v2368_v9, %v1234_v1  ;;  %v963_v54 = vadd.s32 %v3034_v21, %v3040_v31  ;;  %v3094_v43 = vshll.u32 %v1227_v45, 8  ;;  %v1125_v58 = vadd.s32 1, %v2080_v46 }
 0x15f   : > { %v975_v13 = vclz %v2073_v63  ;;  %vm3098_vm15 = vcmp.le.f32.partialorder %v907_v35, 0.7853982  ;;  %v994_v55 = vsel %vm909_vm14, %v993_v50, %v969_v3  ;;  %v1235_v59 = vshrl.u32 %v2363_v56, %v1234_v1 }
 0x160   : > { %v1247_v57 = vor.u32 %v1246_v36, %v1245_v53  ;;  %v1250_v10 = vor.u32 %v1249_v19, %v1248_v28  ;;  %vm1251_vm0 = vcmp.lt.s32.totalorder %v1232_v11, 1  ;;  %vm1253_vm1 = vcmp.lt.s32.totalorder %v1232_v11, 3 }
 0x161   : > { %v2074_v4 = vadd.s32 4294967294, %v975_v13  ;;  %vm1254_vm2 = vcmp.lt.s32.totalorder %v1232_v11, 4  ;;  %v1259_v31 = vsel %vm1251_vm0, %v1238_v16, %v1241_v23  ;;  %v1263_v18 = vsel %vm1251_vm0, %v1241_v23, %v1244_v15 }
 0x162   : > { %v1256_v21 = vsel %vm1254_vm2, %v1244_v15, 2102212464  ;;  %v1260_v26 = vsel %vm1254_vm2, %v1247_v57, 920167782  ;;  %vm1252_vm4 = vcmp.lt.s32.totalorder %v1232_v11, 2  ;;  %v1255_v51 = vsel %vm1251_vm0, %v1235_v59, %v1238_v16 }
 0x163   : > { %vm2075_vm3 = vcmp.lt.s32.totalorder %v2074_v4, 0  ;;  %v1261_v35 = vsel %vm1253_vm1, %v1244_v15, %v1260_v26  ;;  %v1264_v5 = vsel %vm1254_vm2, %v1250_v10, 1326507024  ;;  %v1257_v7 = vsel %vm1253_vm1, %v1241_v23, %v1256_v21 }
 0x164   : > { %v978_v42 = vsel %vm2075_vm3, 0, %v2074_v4  ;;  %v1262_v3 = vsel %vm1252_vm4, %v1259_v31, %v1261_v35  ;;  %v1265_v8 = vsel %vm1253_vm1, %v1247_v57, %v1264_v5  ;;  %vm1106_vm5 = vcmp.lt.s32.totalorder %v3066_v24, 2 }
 0x165   : > { %v979_v40 = vsub.s32 32, %v978_v42  ;;  %v983_v20 = vsub.s32 4294967266, %v978_v42  ;;  %v1266_v47 = vsel %vm1252_vm4, %v1263_v18, %v1265_v8  ;;  %vm1103_vm6 = vweird.f32 %v2847_v17 }
 0x166   : > { %v3112_v45 = vmul.u32.u64.low %v3094_v43, %v1266_v47  ;;  %v3113_v1 = vmul.u32.u64.high %v3094_v43, %v1266_v47, %v3112_v45  ;;  %v3116_v30 = vmul.u32.u64.low %v3094_v43, %v1262_v3  ;;  %v3117_v46 = vmul.u32.u64.high %v3094_v43, %v1262_v3, %v3116_v30 }
 0x167   : > { %v980_v33 = vshll.u32 %v3073_v25, %v978_v42  ;;  %v981_v41 = vshrl.u32 %v963_v54, %v979_v40  ;;  %v984_v29 = vadd.s32 127, %v983_v20  ;;  %vm1126_vm7 = vcmp.gt.s32.totalorder %v1125_v58, 0 }
 0x168   : > { %vm1107_vm8 = vcmp.eq.s32.totalorder %v3066_v24, 0  ;;  %v1258_v34 = vsel %vm1252_vm4, %v1255_v51, %v1257_v7  ;;  %v1122_v49 = vand.u32 8388607, %v1115_v12  ;;  %v1127_v37 = vsel %vm1126_vm7, %v1125_v58, 0 }
 0x169   : > { %v982_v39 = vor.u32 %v981_v41, %v980_v33  ;;  %v985_v52 = vshll.u32 %v984_v29, 23  ;;  %v996_v48 = vsel %vm3098_vm15, 0, %v994_v55  ;;  %v1129_v50 = vand.u32 31, %v1127_v37  ;;  %v2257_v16 = vpop.eup %2256 }
 0x16a   : > { %vm1110_vm10 = vcmp.eq.s32.totalorder %v3066_v24, 2  ;;  %vm1276_vm9 = vc.u32 %v3113_v1, %v3116_v30  ;;  %v1277_v25 = vadd.s32 1, %v3117_v46  ;;  %v3134_v11 = vadd.f32 %v2918_v22, %v3064_v14  ;;  %v2259_v23 = vpop.eup %2258 }
 0x16b   : > { %v1111_v63 = vxor.u32 2147483648, %v2257_v16  ;;  %v986_v15 = vor.u32 4788187, %v985_v52  ;;  %v1274_v53 = vmul.u32 %v3094_v43, %v1258_v34  ;;  %v1130_v36 = vsub.s32 32, %v1129_v50 }
 0x16c   : > { %v1108_v28 = vxor.u32 2147483648, %v2259_v23  ;;  %v1000_v19 = vadd.s32 3, %v996_v48  ;;  %v1278_v54 = vsel %vm1276_vm9, %v1277_v25, %v3117_v46  ;;  %v1123_v13 = vor.u32 8388608, %v1122_v49 }
 0x16d   : > { %v1112_v58 = vsel %vm1110_vm10, %v1111_v63, %v2259_v23  ;;  %v987_v55 = vand.u32 2147483647, %v986_v15  ;;  %v989_v59 = vcvt.s32.f32 %v982_v39  ;;  %v1279_v57 = vadd.s32 %v1278_v54, %v1274_v53 }
 0x16e   : > { %v1109_v14 = vsel %vm1107_vm8, %v2257_v16, %v1108_v28  ;;  %v1128_v10 = vshrl.u32 %v1127_v37, 5  ;;  %v1133_v4 = vshrl.u32 %v2364_v60, %v1130_v36  ;;  %v1136_v21 = vshrl.u32 %v2365_v62, %v1130_v36 }
 0x16f   : > { %v1113_v43 = vsel %vm1106_vm5, %v1109_v14, %v1112_v58  ;;  %v990_v31 = vmul.f32 %v989_v59, %v987_v55  ;;  %v1280_v26 = vadd.s32 536870912, %v1279_v57  ;;  %v1139_v18 = vshrl.u32 %v2366_v0, %v1130_v36 }
 0x170   : > { %v1114_v35 = vsel %vm1103_vm6, nan, %v1113_v43  ;;  %v1132_v5 = vshll.u32 %v2363_v56, %v1129_v50  ;;  %v1135_v42 = vshll.u32 %v2364_v60, %v1129_v50  ;;  %v1138_v51 = vshll.u32 %v2365_v62, %v1129_v50 }
 0x171   : > { %1954 = vst [vmem:[%s2729_s4 + $0x38] sm:$0xff] %v1114_v35  ;;  %v991_v3 = vxor.u32 2147483648, %v990_v31  ;;  %v1281_v8 = vshrl.u32 %v1280_v26, 30  ;;  %v1141_v40 = vshll.u32 %v2366_v0, %v1129_v50  ;;  %v1142_v24 = vshrl.u32 %v2367_v2, %v1130_v36 }
 0x172   : > { %v1134_v20 = vor.u32 %v1133_v4, %v1132_v5  ;;  %v1137_v7 = vor.u32 %v1136_v21, %v1135_v42  ;;  %v1144_v47 = vshll.u32 %v2367_v2, %v1129_v50  ;;  %v1145_v17 = vshrl.u32 %v2368_v9, %v1130_v36 }
 0x173   : > { %v992_v45 = vsel %vm909_vm14, %v991_v3, %v990_v31  ;;  %v1282_v46 = vshll.u32 %v1281_v8, 30  ;;  %v1140_v33 = vor.u32 %v1139_v18, %v1138_v51  ;;  %v1143_v41 = vor.u32 %v1142_v24, %v1141_v40 }
 0x174   : > { %v995_v29 = vsel %vm3098_vm15, %v2921_v27, %v992_v45  ;;  %v3160_v34 = vand.u32 3, %v1000_v19  ;;  %v1146_v49 = vor.u32 %v1145_v17, %v1144_v47  ;;  %v1163_v37 = vshll.u32 %v1123_v13, 8 }
 0x175   : > { %2260 = vcosq.f32 %v995_v29  ;;  %v3162_v39 = vsub.s32 %v1279_v57, %v1282_v46  ;;  %vm1147_vm11 = vcmp.lt.s32.totalorder %v1128_v10, 1  ;;  %v1430_v52 = vand.u32 2139095040, %v3134_v11 }
 0x176   : > { %2262 = vsinq.f32 %v995_v29  ;;  %v1131_v48 = vshrl.u32 %v2363_v56, %v1130_v36  ;;  %vm1150_vm12 = vcmp.lt.s32.totalorder %v1128_v10, 4  ;;  %v1155_v50 = vsel %vm1147_vm11, %v1134_v20, %v1137_v7 }
 0x177   : > { %v1285_v16 = vsub.s32 0, %v3162_v39  ;;  %vm1149_vm13 = vcmp.lt.s32.totalorder %v1128_v10, 3  ;;  %v1152_v61 = vsel %vm1150_vm12, %v1140_v33, 2102212464  ;;  %v1156_v25 = vsel %vm1150_vm12, %v1143_v41, 920167782 }
 0x178   : > { %vm1148_vm14 = vcmp.lt.s32.totalorder %v1128_v10, 2  ;;  %v1157_v23 = vsel %vm1149_vm13, %v1140_v33, %v1156_v25  ;;  %v1159_v63 = vsel %vm1147_vm11, %v1137_v7, %v1140_v33  ;;  %v1160_v15 = vsel %vm1150_vm12, %v1146_v49, 1326507024 }
 0x179   : > { %v2085_v53 = vmin.u32 %v1285_v16, %v3162_v39  ;;  %v1151_v28 = vsel %vm1147_vm11, %v1131_v48, %v1134_v20  ;;  %v1158_v19 = vsel %vm1148_vm14, %v1155_v50, %v1157_v23  ;;  %v1161_v54 = vsel %vm1149_vm13, %v1143_v41, %v1160_v15  ;;  %v215_v41 = vpop.permute.xlu0 %214 }
 0x17a   : > { %v1153_v13 = vsel %vm1149_vm13, %v1137_v7, %v1152_v61  ;;  %v1162_v36 = vsel %vm1148_vm14, %v1159_v63, %v1161_v54  ;;  %v3170_v58 = vmul.u32.u64.low %v1163_v37, %v1158_v19  ;;  %v3171_v55 = vmul.u32.u64.high %v1163_v37, %v1158_v19, %v3170_v58  ;;  %v230_v63 = vpop.permute.xlu1 %229 }
 0x17b   : > { %v1287_v59 = vclz %v2085_v53  ;;  %v3174_v57 = vmul.u32.u64.low %v1163_v37, %v1162_v36  ;;  %v3175_v14 = vmul.u32.u64.high %v1163_v37, %v1162_v36, %v3174_v57  ;;  %v1431_v4 = vshrl.u32 %v1430_v52, 23 }
 0x17c   : > { %vm3179_vm15 = vcmp.le.f32.partialorder %v1219_v38, 0.7853982  ;;  %v1305_v31 = vsub.s32 4, %v1281_v8  ;;  %v1154_v26 = vsel %vm1148_vm14, %v1151_v28, %v1153_v13  ;;  %vm1002_vm0 = vcmp.lt.s32.totalorder %v3160_v34, 2 }
 0x17d   : > { %v2086_v43 = vadd.s32 4294967294, %v1287_v59  ;;  %vm1221_vm1 = vcmp.lt.s32.totalorder %v3016_v6, 0  ;;  %v1173_v18 = vadd.s32 1, %v3171_v55  ;;  %v2092_v35 = vadd.s32 4294967169, %v1431_v4 }
 0x17e   : > { %vm1003_vm2 = vcmp.eq.s32.totalorder %v3160_v34, 0  ;;  %v1275_v5 = vadd.s32 %v3116_v30, %v3113_v1  ;;  %v1427_v38 = vand.u32 2147483647, %v3134_v11  ;;  %v1170_v51 = vmul.u32 %v1163_v37, %v1154_v26 }
 0x17f   : > { %vm2087_vm3 = vcmp.lt.s32.totalorder %v2086_v43, 0  ;;  %vm1172_vm4 = vc.u32 %v3175_v14, %v3170_v58  ;;  %v1437_v10 = vadd.s32 1, %v2092_v35  ;;  %v1306_v24 = vsel %vm1221_vm1, %v1305_v31, %v1281_v8 }
 0x180   : > { %v1290_v42 = vsel %vm2087_vm3, 0, %v2086_v43  ;;  %v1174_v20 = vsel %vm1172_vm4, %v1173_v18, %v3171_v55  ;;  %vm1006_vm5 = vcmp.eq.s32.totalorder %v3160_v34, 2  ;;  %v1308_v49 = vsel %vm3179_vm15, 0, %v1306_v24 }
 0x181   : > { %v1291_v3 = vsub.s32 32, %v1290_v42  ;;  %v1295_v40 = vsub.s32 4294967266, %v1290_v42  ;;  %v1292_v1 = vshll.u32 %v3162_v39, %v1290_v42  ;;  %v1175_v30 = vadd.s32 %v1174_v20, %v1170_v51 }
 0x182   : > { %v2261_v7 = vpop.eup %2260  ;;  %vm1438_vm6 = vcmp.gt.s32.totalorder %v1437_v10, 0  ;;  %v1434_v39 = vand.u32 8388607, %v1427_v38  ;;  %v256_v23 = vmul.f32 %v2901_v44, %v215_v41  ;;  %vm999_vm7 = vweird.f32 %v2921_v27 }
 0x183   : > { %v2263_v47 = vpop.eup %2262  ;;  %v1007_v17 = vxor.u32 2147483648, %v2261_v7  ;;  %v1293_v45 = vshrl.u32 %v1275_v5, %v1291_v3  ;;  %v1296_v46 = vadd.s32 127, %v1295_v40  ;;  %v1439_v33 = vsel %vm1438_vm6, %v1437_v10, 0 }
 0x184   : > { %v1004_v29 = vxor.u32 2147483648, %v2263_v47  ;;  %v1176_v8 = vadd.s32 536870912, %v1175_v30  ;;  %v1441_v37 = vand.u32 31, %v1439_v33  ;;  %v3210_v19 = vadd.s32 3, %v1308_v49 }
 0x185   : > { %v1008_v52 = vsel %vm1006_vm5, %v1007_v17, %v2263_v47  ;;  %v1294_v48 = vor.u32 %v1293_v45, %v1292_v1  ;;  %v1297_v50 = vshll.u32 %v1296_v46, 23  ;;  %v1435_v55 = vor.u32 8388608, %v1434_v39 }
 0x186   : > { %v1005_v16 = vsel %vm1003_vm2, %v2261_v7, %v1004_v29  ;;  %v3204_v61 = vshrl.u32 %v1176_v8, 30  ;;  %v1442_v25 = vsub.s32 32, %v1441_v37  ;;  %v3215_v59 = vmul.f32 %v2901_v44, %v230_v63 }
 0x187   : > { %v1009_v15 = vsel %vm1002_vm0, %v1005_v16, %v1008_v52  ;;  %v1298_v53 = vor.u32 4788187, %v1297_v50  ;;  %v1301_v36 = vcvt.s32.f32 %v1294_v48  ;;  %v3222_v4 = vadd.f32 %v2918_v22, %v256_v23 }
 0x188   : > { %v1010_v28 = vsel %vm999_vm7, nan, %v1009_v15  ;;  %v1178_v54 = vshll.u32 %v3204_v61, 30  ;;  %v1445_v27 = vshrl.u32 %v2364_v60, %v1442_v25  ;;  %v1448_v34 = vshrl.u32 %v2365_v62, %v1442_v25 }
 0x189   : > { %1953 = vst [vmem:[%s2729_s4 + $0x30] sm:$0xff] %v1010_v28  ;;  %v1299_v13 = vand.u32 2147483647, %v1298_v53  ;;  %v1440_v31 = vshrl.u32 %v1439_v33, 5  ;;  %v1444_v26 = vshll.u32 %v2363_v56, %v1441_v37  ;;  %v1451_v18 = vshrl.u32 %v2366_v0, %v1442_v25 }
 0x18a   : > { %v3217_v57 = vsub.s32 %v1175_v30, %v1178_v54  ;;  %v1447_v44 = vshll.u32 %v2364_v60, %v1441_v37  ;;  %v1450_v5 = vshll.u32 %v2365_v62, %v1441_v37  ;;  %v1454_v42 = vshrl.u32 %v2367_v2, %v1442_v25 }
 0x18b   : > { %v1302_v43 = vmul.f32 %v1301_v36, %v1299_v13  ;;  %v1453_v10 = vshll.u32 %v2366_v0, %v1441_v37  ;;  %v1456_v3 = vshll.u32 %v2367_v2, %v1441_v37  ;;  %v1457_v40 = vshrl.u32 %v2368_v9, %v1442_v25 }
 0x18c   : > { %v1181_v35 = vsub.s32 0, %v3217_v57  ;;  %v1171_v24 = vadd.s32 %v3170_v58, %v3175_v14  ;;  %v1446_v7 = vor.u32 %v1445_v27, %v1444_v26  ;;  %v1449_v1 = vor.u32 %v1448_v34, %v1447_v44 }
 0x18d   : > { %v1303_v51 = vxor.u32 2147483648, %v1302_v43  ;;  %v1452_v47 = vor.u32 %v1451_v18, %v1450_v5  ;;  %v1455_v17 = vor.u32 %v1454_v42, %v1453_v10  ;;  %v1458_v45 = vor.u32 %v1457_v40, %v1456_v3 }
 0x18e   : > { %v2081_v20 = vmin.u32 %v1181_v35, %v3217_v57  ;;  %vm1117_vm8 = vcmp.lt.s32.totalorder %v3043_v32, 0  ;;  %v1201_v41 = vsub.s32 4, %v3204_v61  ;;  %v1475_v58 = vshll.u32 %v1435_v55, 8 }
 0x18f   : > { %v1304_v30 = vsel %vm1221_vm1, %v1303_v51, %v1302_v43  ;;  %v1443_v14 = vshrl.u32 %v2363_v56, %v1442_v25  ;;  %vm1459_vm10 = vcmp.lt.s32.totalorder %v1440_v31, 1  ;;  %vm1461_vm9 = vcmp.lt.s32.totalorder %v1440_v31, 3 }
 0x190   : > { %v1307_v46 = vsel %vm3179_vm15, %v3016_v6, %v1304_v30  ;;  %v1183_v33 = vclz %v2081_v20  ;;  %vm1462_vm11 = vcmp.lt.s32.totalorder %v1440_v31, 4  ;;  %v1467_v49 = vsel %vm1459_vm10, %v1446_v7, %v1449_v1 }
 0x191   : > { %2264 = vcosq.f32 %v1307_v46  ;;  %v1464_v8 = vsel %vm1462_vm11, %v1452_v47, 2102212464  ;;  %v1468_v37 = vsel %vm1462_vm11, %v1455_v17, 920167782  ;;  %v1471_v52 = vsel %vm1459_vm10, %v1449_v1, %v1452_v47 }
 0x192   : > { %2266 = vsinq.f32 %v1307_v46  ;;  %v2082_v29 = vadd.s32 4294967294, %v1183_v33  ;;  %v1472_v21 = vsel %vm1462_vm11, %v1458_v45, 1326507024  ;;  %vm1460_vm13 = vcmp.lt.s32.totalorder %v1440_v31, 2 }
 0x193   : > { %v1469_v48 = vsel %vm1461_vm9, %v1452_v47, %v1468_v37  ;;  %v1473_v50 = vsel %vm1461_vm9, %v1455_v17, %v1472_v21  ;;  %v1463_v16 = vsel %vm1459_vm10, %v1443_v14, %v1446_v7  ;;  %v1465_v53 = vsel %vm1461_vm9, %v1449_v1, %v1464_v8 }
 0x194   : > { %vm2083_vm12 = vcmp.lt.s32.totalorder %v2082_v29, 0  ;;  %v1470_v25 = vsel %vm1460_vm13, %v1467_v49, %v1469_v48  ;;  %v1474_v23 = vsel %vm1460_vm13, %v1471_v52, %v1473_v50  ;;  %v1326_v28 = vand.u32 2139095040, %v3222_v4 }
 0x195   : > { %v1186_v39 = vsel %vm2083_vm12, 0, %v2082_v29  ;;  %v3250_v54 = vmul.u32.u64.low %v1475_v58, %v1474_v23  ;;  %v3251_v13 = vmul.u32.u64.high %v1475_v58, %v1474_v23, %v3250_v54  ;;  %v1202_v18 = vsel %vm1117_vm8, %v1201_v41, %v3204_v61 }
 0x196   : > { %v1187_v63 = vsub.s32 32, %v1186_v39  ;;  %v1191_v15 = vsub.s32 4294967266, %v1186_v39  ;;  %v3253_v36 = vmul.u32.u64.low %v1475_v58, %v1470_v25  ;;  %v3254_v55 = vmul.u32.u64.high %v1475_v58, %v1470_v25, %v3253_v36 }
 0x197   : > { %v1188_v27 = vshll.u32 %v3217_v57, %v1186_v39  ;;  %v1327_v26 = vshrl.u32 %v1326_v28, 23  ;;  %v1466_v35 = vsel %vm1460_vm13, %v1463_v16, %v1465_v53  ;;  %v3264_v44 = vadd.f32 %v2918_v22, %v3215_v59 }
 0x198   : > { %v1189_v34 = vshrl.u32 %v1171_v24, %v1187_v63  ;;  %v1192_v43 = vadd.s32 127, %v1191_v15  ;;  %vm3268_vm14 = vcmp.le.f32.partialorder %v1115_v12, 0.7853982  ;;  %v1313_v10 = vand.u32 3, %v3210_v19 }
 0x199   : > { %v2088_v51 = vadd.s32 4294967169, %v1327_v26  ;;  %vm1484_vm15 = vc.u32 %v3251_v13, %v3253_v36  ;;  %v1485_v61 = vadd.s32 1, %v3254_v55  ;;  %v1323_v31 = vand.u32 2147483647, %v3222_v4 }
 0x19a   : > { %v1190_v57 = vor.u32 %v1189_v34, %v1188_v27  ;;  %v1193_v42 = vshll.u32 %v1192_v43, 23  ;;  %v1204_v59 = vsel %vm3268_vm14, 0, %v1202_v18  ;;  %v1482_v12 = vmul.u32 %v1475_v58, %v1466_v35 }
 0x19b   : > { %v1333_v3 = vadd.s32 1, %v2088_v51  ;;  %v1486_v40 = vsel %vm1484_vm15, %v1485_v61, %v3254_v55  ;;  %v1638_v24 = vand.u32 2139095040, %v3264_v44  ;;  %vm1318_vm1 = vcmp.eq.s32.totalorder %v1313_v10, 2 }
 0x19c   : > { %v1194_v22 = vor.u32 4788187, %v1193_v42  ;;  %v1197_v19 = vcvt.s32.f32 %v1190_v57  ;;  %v1487_v1 = vadd.s32 %v1486_v40, %v1482_v12  ;;  %v1208_v17 = vadd.s32 3, %v1204_v59 }
 0x19d   : > { %vm1334_vm0 = vcmp.gt.s32.totalorder %v1333_v3, 0  ;;  %v1330_v58 = vand.u32 8388607, %v1323_v31  ;;  %vm1315_vm2 = vcmp.eq.s32.totalorder %v1313_v10, 0  ;;  %v1639_v49 = vshrl.u32 %v1638_v24, 23 }
 0x19e   : > { %v2265_v20 = vpop.eup %2264  ;;  %v1195_v7 = vand.u32 2147483647, %v1194_v22  ;;  %v1335_v45 = vsel %vm1334_vm0, %v1333_v3, 0  ;;  %v1488_v41 = vadd.s32 536870912, %v1487_v1  ;;  %vm1314_vm3 = vcmp.lt.s32.totalorder %v1313_v10, 2 }
 0x19f   : > { %v2267_v30 = vpop.eup %2266  ;;  %v1319_v47 = vxor.u32 2147483648, %v2265_v20  ;;  %v1337_v29 = vand.u32 31, %v1335_v45  ;;  %vm1311_vm4 = vweird.f32 %v3016_v6  ;;  %v3286_v48 = vand.u32 3, %v1208_v17 }
 0x1a0   : > { %v1316_v46 = vxor.u32 2147483648, %v2267_v30  ;;  %v1198_v33 = vmul.f32 %v1197_v19, %v1195_v7  ;;  %v3283_v52 = vshrl.u32 %v1488_v41, 30  ;;  %v1331_v23 = vor.u32 8388608, %v1330_v58 }
 0x1a1   : > { %v1320_v14 = vsel %vm1318_vm1, %v1319_v47, %v2267_v30  ;;  %v1338_v50 = vsub.s32 32, %v1337_v29  ;;  %v2100_v53 = vadd.s32 4294967169, %v1639_v49  ;;  %v1340_v54 = vshll.u32 %v2363_v56, %v1337_v29 }
 0x1a2   : > { %v1317_v8 = vsel %vm1315_vm2, %v2265_v20, %v1316_v46  ;;  %v1199_v37 = vxor.u32 2147483648, %v1198_v33  ;;  %v1490_v25 = vshll.u32 %v3283_v52, 30  ;;  %v1343_v55 = vshll.u32 %v2364_v60, %v1337_v29 }
 0x1a3   : > { %v1321_v21 = vsel %vm1314_vm3, %v1317_v8, %v1320_v14  ;;  %v1341_v15 = vshrl.u32 %v2364_v60, %v1338_v50  ;;  %v1344_v6 = vshrl.u32 %v2365_v62, %v1338_v50  ;;  %v1336_v27 = vshrl.u32 %v1335_v45, 5 }
 0x1a4   : > { %v1322_v39 = vsel %vm1311_vm4, nan, %v1321_v21  ;;  %v1200_v16 = vsel %vm1117_vm8, %v1199_v37, %v1198_v33  ;;  %v3297_v28 = vsub.s32 %v1487_v1, %v1490_v25  ;;  %v1346_v34 = vshll.u32 %v2365_v62, %v1337_v29 }
 0x1a5   : > { %1956 = vst [vmem:[%s2729_s4 + $0x48] sm:$0xff] %v1322_v39  ;;  %v1203_v63 = vsel %vm3268_vm14, %v3043_v32, %v1200_v16  ;;  %v1635_v43 = vand.u32 2147483647, %v3264_v44  ;;  %v1342_v18 = vor.u32 %v1341_v15, %v1340_v54  ;;  %v1345_v35 = vor.u32 %v1344_v6, %v1343_v55 }
 0x1a6   : > { %2268 = vcosq.f32 %v1203_v63  ;;  %v1493_v26 = vsub.s32 0, %v3297_v28  ;;  %v1347_v5 = vshrl.u32 %v2366_v0, %v1338_v50  ;;  %v1349_v57 = vshll.u32 %v2366_v0, %v1337_v29 }
 0x1a7   : > { %2270 = vsinq.f32 %v1203_v63  ;;  %v1350_v42 = vshrl.u32 %v2367_v2, %v1338_v50  ;;  %v1352_v51 = vshll.u32 %v2367_v2, %v1337_v29  ;;  %v1353_v10 = vshrl.u32 %v2368_v9, %v1338_v50 }
 0x1a8   : > { %v2093_v61 = vmin.u32 %v1493_v26, %v3297_v28  ;;  %v1348_v22 = vor.u32 %v1347_v5, %v1346_v34  ;;  %v1371_v59 = vshll.u32 %v1331_v23, 8  ;;  %v1645_v12 = vadd.s32 1, %v2100_v53 }
 0x1a9   : > { %v1339_v3 = vshrl.u32 %v2363_v56, %v1338_v50  ;;  %v1351_v40 = vor.u32 %v1350_v42, %v1349_v57  ;;  %v1354_v24 = vor.u32 %v1353_v10, %v1352_v51  ;;  %vm1355_vm5 = vcmp.lt.s32.totalorder %v1336_v27, 1 }
 0x1aa   : > { %v1495_v20 = vclz %v2093_v61  ;;  %vm1356_vm6 = vcmp.lt.s32.totalorder %v1336_v27, 2  ;;  %vm1357_vm7 = vcmp.lt.s32.totalorder %v1336_v27, 3  ;;  %vm1358_vm8 = vcmp.lt.s32.totalorder %v1336_v27, 4 }
 0x1ab   : > { %vm1214_vm10 = vcmp.eq.s32.totalorder %v3286_v48, 2  ;;  %v1360_v7 = vsel %vm1358_vm8, %v1348_v22, 2102212464  ;;  %v1363_v19 = vsel %vm1355_vm5, %v1342_v18, %v1345_v35  ;;  %v1364_v1 = vsel %vm1358_vm8, %v1351_v40, 920167782 }
 0x1ac   : > { %v1367_v30 = vsel %vm1355_vm5, %v1345_v35, %v1348_v22  ;;  %vm1211_vm9 = vcmp.eq.s32.totalorder %v3286_v48, 0  ;;  %v2094_v47 = vadd.s32 4294967294, %v1495_v20  ;;  %v1359_v17 = vsel %vm1355_vm5, %v1339_v3, %v1342_v18  ;;  %v225_v18 = vpop.permute.xlu0 %224 }
 0x1ad   : > { %v1365_v45 = vsel %vm1357_vm7, %v1348_v22, %v1364_v1  ;;  %v1368_v46 = vsel %vm1358_vm8, %v1354_v24, 1326507024  ;;  %vm1429_vm11 = vcmp.lt.s32.totalorder %v3134_v11, 0  ;;  %v1361_v33 = vsel %vm1357_vm7, %v1345_v35, %v1360_v7  ;;  %v3343_v22 = vld [vmem:[%s3665_s1] ss:$0 sm:$0xff] }
 0x1ae   : > { %v1366_v41 = vsel %vm1356_vm6, %v1363_v19, %v1365_v45  ;;  %v1369_v58 = vsel %vm1357_vm7, %v1351_v40, %v1368_v46  ;;  %vm1646_vm12 = vcmp.gt.s32.totalorder %v1645_v12, 0  ;;  %vm1207_vm13 = vweird.f32 %v3043_v32 }
 0x1af   : > { %vm2095_vm14 = vcmp.lt.s32.totalorder %v2094_v47, 0  ;;  %v1370_v14 = vsel %vm1356_vm6, %v1367_v30, %v1369_v58  ;;  %v3317_v29 = vmul.u32.u64.low %v1371_v59, %v1366_v41  ;;  %v3318_v49 = vmul.u32.u64.high %v1371_v59, %v1366_v41, %v3317_v29 }
 0x1b0   : > { %v1483_v8 = vadd.s32 %v3253_v36, %v3251_v13  ;;  %v1498_v37 = vsel %vm2095_vm14, 0, %v2094_v47  ;;  %v3323_v21 = vmul.u32.u64.low %v1371_v59, %v1370_v14  ;;  %v3324_v50 = vmul.u32.u64.high %v1371_v59, %v1370_v14, %v3323_v21 }
 0x1b1   : > { %v1499_v39 = vsub.s32 32, %v1498_v37  ;;  %v1503_v16 = vsub.s32 4294967266, %v1498_v37  ;;  %v1362_v25 = vsel %vm1356_vm6, %v1359_v17, %v1361_v33  ;;  %v1647_v23 = vsel %vm1646_vm12, %v1645_v12, 0 }
 0x1b2   : > { %v1500_v15 = vshll.u32 %v3297_v28, %v1498_v37  ;;  %v1513_v6 = vsub.s32 4, %v3283_v52  ;;  %v1642_v53 = vand.u32 8388607, %v1635_v43  ;;  %v1649_v54 = vand.u32 31, %v1647_v23 }
 0x1b3   : > { %v2269_v63 = vpop.eup %2268  ;;  %v1501_v36 = vshrl.u32 %v1483_v8, %v1499_v39  ;;  %v1504_v34 = vadd.s32 127, %v1503_v16  ;;  %v1381_v26 = vadd.s32 1, %v3318_v49  ;;  %v1378_v27 = vmul.u32 %v1371_v59, %v1362_v25 }
 0x1b4   : > { %v2271_v55 = vpop.eup %2270  ;;  %v1215_v13 = vxor.u32 2147483648, %v2269_v63  ;;  %vm1380_vm15 = vc.u32 %v3324_v50, %v3317_v29  ;;  %v1650_v5 = vsub.s32 32, %v1649_v54  ;;  %vm1210_vm0 = vcmp.lt.s32.totalorder %v3286_v48, 2 }
 0x1b5   : > { %v1212_v35 = vxor.u32 2147483648, %v2271_v55  ;;  %v1502_v57 = vor.u32 %v1501_v36, %v1500_v15  ;;  %v1505_v42 = vshll.u32 %v1504_v34, 23  ;;  %v1382_v51 = vsel %vm1380_vm15, %v1381_v26, %v3318_v49 }
 0x1b6   : > { %v1216_v28 = vsel %vm1214_vm10, %v1215_v13, %v2271_v55  ;;  %v1383_v61 = vadd.s32 %v1382_v51, %v1378_v27  ;;  %v258_v59 = vmul.f32 %v3343_v22, %v225_v18  ;;  %v1514_v40 = vsel %vm1429_vm11, %v1513_v6, %v3283_v52 }
 0x1b7   : > { %v1213_v10 = vsel %vm1211_vm9, %v2269_v63, %v1212_v35  ;;  %v1506_v3 = vor.u32 4788187, %v1505_v42  ;;  %v1643_v24 = vor.u32 8388608, %v1642_v53  ;;  %v1653_v7 = vshrl.u32 %v2364_v60, %v1650_v5 }
 0x1b8   : > { %v1217_v12 = vsel %vm1210_vm0, %v1213_v10, %v1216_v28  ;;  %v1384_v48 = vadd.s32 536870912, %v1383_v61  ;;  %v1656_v19 = vshrl.u32 %v2365_v62, %v1650_v5  ;;  %v1509_v30 = vcvt.s32.f32 %v1502_v57 }
 0x1b9   : > { %v1218_v20 = vsel %vm1207_vm13, nan, %v1217_v12  ;;  %v1507_v1 = vand.u32 2147483647, %v1506_v3  ;;  %v1648_v47 = vshrl.u32 %v1647_v23, 5  ;;  %v1659_v17 = vshrl.u32 %v2366_v0, %v1650_v5 }
 0x1ba   : > { %1955 = vst [vmem:[%s2729_s4 + $0x40] sm:$0xff] %v1218_v20  ;;  %v1385_v45 = vshrl.u32 %v1384_v48, 30  ;;  %v1652_v46 = vshll.u32 %v2363_v56, %v1649_v54  ;;  %v1655_v52 = vshll.u32 %v2364_v60, %v1649_v54  ;;  %v1662_v33 = vshrl.u32 %v2367_v2, %v1650_v5 }
 0x1bb   : > { %v1510_v32 = vmul.f32 %v1509_v30, %v1507_v1  ;;  %v1658_v41 = vshll.u32 %v2365_v62, %v1649_v54  ;;  %v1661_v58 = vshll.u32 %v2366_v0, %v1649_v54  ;;  %v1665_v14 = vshrl.u32 %v2368_v9, %v1650_v5 }
 0x1bc   : > { %vm3363_vm1 = vcmp.le.f32.partialorder %v1427_v38, 0.7853982  ;;  %v1386_v8 = vshll.u32 %v1385_v45, 30  ;;  %v1654_v37 = vor.u32 %v1653_v7, %v1652_v46  ;;  %v1657_v21 = vor.u32 %v1656_v19, %v1655_v52  ;;  %v3375_v38 = vld [vmem:[%s3665_s1 + $0x1] ss:$0 sm:$0xff] }
 0x1bd   : > { %v1511_v39 = vxor.u32 2147483648, %v1510_v32  ;;  %v1660_v16 = vor.u32 %v1659_v17, %v1658_v41  ;;  %v1663_v25 = vor.u32 %v1662_v33, %v1661_v58  ;;  %v1664_v23 = vshll.u32 %v2367_v2, %v1649_v54 }
 0x1be   : > { %v1516_v63 = vsel %vm3363_vm1, 0, %v1514_v40  ;;  %v3370_v15 = vsub.s32 %v1383_v61, %v1386_v8  ;;  %v1683_v6 = vshll.u32 %v1643_v24, 8  ;;  %v3378_v53 = vadd.f32 %v3375_v38, %v258_v59 }
 0x1bf   : > { %v1512_v55 = vsel %vm1429_vm11, %v1511_v39, %v1510_v32  ;;  %v1651_v13 = vshrl.u32 %v2363_v56, %v1650_v5  ;;  %v1666_v54 = vor.u32 %v1665_v14, %v1664_v23  ;;  %vm1667_vm2 = vcmp.lt.s32.totalorder %v1648_v47, 1 }
 0x1c0   : > { %v1515_v36 = vsel %vm3363_vm1, %v3134_v11, %v1512_v55  ;;  %v1389_v34 = vsub.s32 0, %v3370_v15  ;;  %vm1670_vm3 = vcmp.lt.s32.totalorder %v1648_v47, 4  ;;  %v1675_v26 = vsel %vm1667_vm2, %v1654_v37, %v1657_v21 }
 0x1c1   : > { %2272 = vcosq.f32 %v1515_v36  ;;  %vm1669_vm4 = vcmp.lt.s32.totalorder %v1648_v47, 3  ;;  %v1672_v18 = vsel %vm1670_vm3, %v1660_v16, 2102212464  ;;  %v1676_v35 = vsel %vm1670_vm3, %v1663_v25, 920167782 }
 0x1c2   : > { %2274 = vsinq.f32 %v1515_v36  ;;  %v2089_v27 = vmin.u32 %v1389_v34, %v3370_v15  ;;  %vm1668_vm5 = vcmp.lt.s32.totalorder %v1648_v47, 2  ;;  %v1677_v5 = vsel %vm1669_vm4, %v1660_v16, %v1676_v35 }
 0x1c3   : > { %v1520_v28 = vadd.s32 3, %v1516_v63  ;;  %v1678_v57 = vsel %vm1668_vm5, %v1675_v26, %v1677_v5  ;;  %v1679_v42 = vsel %vm1667_vm2, %v1657_v21, %v1660_v16  ;;  %v1680_v51 = vsel %vm1670_vm3, %v1666_v54, 1326507024 }
 0x1c4   : > { %v1391_v10 = vclz %v2089_v27  ;;  %v1409_v61 = vsub.s32 4, %v1385_v45  ;;  %v1671_v59 = vsel %vm1667_vm2, %v1651_v13, %v1654_v37  ;;  %v1673_v12 = vsel %vm1669_vm4, %v1657_v21, %v1672_v18  ;;  %v240_v37 = vpop.permute.xlu1 %239 }
 0x1c5   : > { %v1681_v3 = vsel %vm1669_vm4, %v1663_v25, %v1680_v51  ;;  %v3392_v40 = vmul.u32.u64.low %v1683_v6, %v1678_v57  ;;  %v3393_v24 = vmul.u32.u64.high %v1683_v6, %v1678_v57, %v3392_v40  ;;  %v1534_v20 = vand.u32 2139095040, %v3378_v53 }
 0x1c6   : > { %v2090_v48 = vadd.s32 4294967294, %v1391_v10  ;;  %v1682_v7 = vsel %vm1668_vm5, %v1679_v42, %v1681_v3  ;;  %vm1325_vm6 = vcmp.lt.s32.totalorder %v3222_v4, 0  ;;  %vm3404_vm7 = vcmp.le.f32.partialorder %v1323_v31, 0.7853982 }
 0x1c7   : > { %v3399_v19 = vmul.u32.u64.low %v1683_v6, %v1682_v7  ;;  %v3400_v1 = vmul.u32.u64.high %v1683_v6, %v1682_v7, %v3399_v19  ;;  %v1535_v30 = vshrl.u32 %v1534_v20, 23  ;;  %v1410_v46 = vsel %vm1325_vm6, %v1409_v61, %v1385_v45 }
 0x1c8   : > { %vm2091_vm8 = vcmp.lt.s32.totalorder %v2090_v48, 0  ;;  %v1674_v52 = vsel %vm1668_vm5, %v1671_v59, %v1673_v12  ;;  %v1521_v33 = vand.u32 3, %v1520_v28  ;;  %v1693_v41 = vadd.s32 1, %v3393_v24 }
 0x1c9   : > { %v1394_v32 = vsel %vm2091_vm8, 0, %v2090_v48  ;;  %v2096_v58 = vadd.s32 4294967169, %v1535_v30  ;;  %v1379_v14 = vadd.s32 %v3317_v29, %v3324_v50  ;;  %v1531_v31 = vand.u32 2147483647, %v3378_v53 }
 0x1ca   : > { %v1395_v49 = vsub.s32 32, %v1394_v32  ;;  %v1399_v8 = vsub.s32 4294967266, %v1394_v32  ;;  %v1412_v21 = vsel %vm3404_vm7, 0, %v1410_v46  ;;  %v1690_v39 = vmul.u32 %v1683_v6, %v1674_v52 }
 0x1cb   : > { %vm1692_vm10 = vc.u32 %v3400_v1, %v3392_v40  ;;  %v1541_v47 = vadd.s32 1, %v2096_v58  ;;  %v1396_v45 = vshll.u32 %v3370_v15, %v1394_v32  ;;  %vm1519_vm9 = vweird.f32 %v3134_v11 }
 0x1cc   : > { %v1397_v16 = vshrl.u32 %v1379_v14, %v1395_v49  ;;  %v1400_v25 = vadd.s32 127, %v1399_v8  ;;  %v1694_v23 = vsel %vm1692_vm10, %v1693_v41, %v3393_v24  ;;  %v261_v50 = vmul.f32 %v3343_v22, %v240_v37 }
 0x1cd   : > { %v1695_v29 = vadd.s32 %v1694_v23, %v1690_v39  ;;  %vm1542_vm11 = vcmp.gt.s32.totalorder %v1541_v47, 0  ;;  %v1416_v6 = vadd.s32 3, %v1412_v21  ;;  %v1538_v15 = vand.u32 8388607, %v1531_v31 }
 0x1ce   : > { %v2273_v63 = vpop.eup %2272  ;;  %v1398_v55 = vor.u32 %v1397_v16, %v1396_v45  ;;  %v1401_v13 = vshll.u32 %v1400_v25, 23  ;;  %v1543_v54 = vsel %vm1542_vm11, %v1541_v47, 0  ;;  %vm1523_vm12 = vcmp.eq.s32.totalorder %v1521_v33, 0 }
 0x1cf   : > { %v2275_v36 = vpop.eup %2274  ;;  %v1527_v34 = vxor.u32 2147483648, %v2273_v63  ;;  %v1696_v26 = vadd.s32 536870912, %v1695_v29  ;;  %v1545_v18 = vand.u32 31, %v1543_v54  ;;  %vm1526_vm13 = vcmp.eq.s32.totalorder %v1521_v33, 2 }
 0x1d0   : > { %v1524_v35 = vxor.u32 2147483648, %v2275_v36  ;;  %v1402_v27 = vor.u32 4788187, %v1401_v13  ;;  %v3428_v42 = vadd.f32 %v3375_v38, %v261_v50  ;;  %vm1522_vm14 = vcmp.lt.s32.totalorder %v1521_v33, 2 }
 0x1d1   : > { %v1528_v5 = vsel %vm1526_vm13, %v1527_v34, %v2275_v36  ;;  %v3425_v28 = vshrl.u32 %v1696_v26, 30  ;;  %v1546_v57 = vsub.s32 32, %v1545_v18  ;;  %v1405_v61 = vcvt.s32.f32 %v1398_v55 }
 0x1d2   : > { %v1525_v51 = vsel %vm1523_vm12, %v2273_v63, %v1524_v35  ;;  %v1403_v10 = vand.u32 2147483647, %v1402_v27  ;;  %v3430_v12 = vand.u32 3, %v1416_v6  ;;  %v1539_v24 = vor.u32 8388608, %v1538_v15 }
 0x1d3   : > { %v1529_v59 = vsel %vm1522_vm14, %v1525_v51, %v1528_v5  ;;  %v1698_v3 = vshll.u32 %v3425_v28, 30  ;;  %v1549_v7 = vshrl.u32 %v2364_v60, %v1546_v57  ;;  %v1552_v19 = vshrl.u32 %v2365_v62, %v1546_v57 }
 0x1d4   : > { %v1530_v20 = vsel %vm1519_vm9, nan, %v1529_v59  ;;  %v1406_v48 = vmul.f32 %v1405_v61, %v1403_v10  ;;  %v1548_v46 = vshll.u32 %v2363_v56, %v1545_v18  ;;  %v1555_v52 = vshrl.u32 %v2366_v0, %v1546_v57 }
 0x1d5   : > { %1958 = vst [vmem:[%s2729_s4 + $0x58] sm:$0xff] %v1530_v20  ;;  %v3438_v30 = vsub.s32 %v1695_v29, %v1698_v3  ;;  %v1846_v33 = vand.u32 2139095040, %v3428_v42  ;;  %v1544_v41 = vshrl.u32 %v1543_v54, 5  ;;  %v1551_v58 = vshll.u32 %v2364_v60, %v1545_v18 }
 0x1d6   : > { %v1407_v32 = vxor.u32 2147483648, %v1406_v48  ;;  %v1554_v11 = vshll.u32 %v2365_v62, %v1545_v18  ;;  %v1550_v49 = vor.u32 %v1549_v7, %v1548_v46  ;;  %v1557_v8 = vshll.u32 %v2366_v0, %v1545_v18 }
 0x1d7   : > { %v1701_v14 = vsub.s32 0, %v3438_v30  ;;  %v1558_v37 = vshrl.u32 %v2367_v2, %v1546_v57  ;;  %v1553_v39 = vor.u32 %v1552_v19, %v1551_v58  ;;  %v1560_v47 = vshll.u32 %v2367_v2, %v1545_v18 }
 0x1d8   : > { %v1408_v21 = vsel %vm1325_vm6, %v1407_v32, %v1406_v48  ;;  %v1561_v45 = vshrl.u32 %v2368_v9, %v1546_v57  ;;  %v1556_v23 = vor.u32 %v1555_v52, %v1554_v11  ;;  %v1579_v63 = vshll.u32 %v1539_v24, 8 }
 0x1d9   : > { %v1411_v16 = vsel %vm3404_vm7, %v3222_v4, %v1408_v21  ;;  %v2101_v25 = vmin.u32 %v1701_v14, %v3438_v30  ;;  %v1559_v29 = vor.u32 %v1558_v37, %v1557_v8  ;;  %v1847_v55 = vshrl.u32 %v1846_v33, 23 }
 0x1da   : > { %2276 = vcosq.f32 %v1411_v16  ;;  %v1562_v50 = vor.u32 %v1561_v45, %v1560_v47  ;;  %v1547_v6 = vshrl.u32 %v2363_v56, %v1546_v57  ;;  %vm1563_vm15 = vcmp.lt.s32.totalorder %v1544_v41, 1 }
 0x1db   : > { %2278 = vsinq.f32 %v1411_v16  ;;  %v1703_v13 = vclz %v2101_v25  ;;  %vm1564_vm0 = vcmp.lt.s32.totalorder %v1544_v41, 2  ;;  %vm1565_vm1 = vcmp.lt.s32.totalorder %v1544_v41, 3 }
 0x1dc   : > { %vm1566_vm2 = vcmp.lt.s32.totalorder %v1544_v41, 4  ;;  %v1571_v54 = vsel %vm1563_vm15, %v1550_v49, %v1553_v39  ;;  %v1575_v26 = vsel %vm1563_vm15, %v1553_v39, %v1556_v23  ;;  %v1567_v15 = vsel %vm1563_vm15, %v1547_v6, %v1550_v49  ;;  %v235_v41 = vpop.permute.xlu0 %234 }
 0x1dd   : > { %v2102_v36 = vadd.s32 4294967294, %v1703_v13  ;;  %v1568_v17 = vsel %vm1566_vm2, %v1556_v23, 2102212464  ;;  %v1572_v34 = vsel %vm1566_vm2, %v1559_v29, 920167782  ;;  %v2108_v27 = vadd.s32 4294967169, %v1847_v55 }
 0x1de   : > { %v1573_v18 = vsel %vm1565_vm1, %v1556_v23, %v1572_v34  ;;  %v1576_v35 = vsel %vm1566_vm2, %v1562_v50, 1326507024  ;;  %v1569_v5 = vsel %vm1565_vm1, %v1553_v39, %v1568_v17  ;;  %vm1637_vm4 = vcmp.lt.s32.totalorder %v3264_v44, 0 }
 0x1df   : > { %vm2103_vm3 = vcmp.lt.s32.totalorder %v2102_v36, 0  ;;  %v1574_v51 = vsel %vm1564_vm0, %v1571_v54, %v1573_v18  ;;  %v1577_v10 = vsel %vm1565_vm1, %v1559_v29, %v1576_v35  ;;  %v1691_v24 = vadd.s32 %v3392_v40, %v3400_v1 }
 0x1e0   : > { %v1706_v61 = vsel %vm2103_vm3, 0, %v2102_v36  ;;  %v1578_v57 = vsel %vm1564_vm0, %v1575_v26, %v1577_v10  ;;  %v3459_v59 = vmul.u32.u64.low %v1579_v63, %v1574_v51  ;;  %v3460_v3 = vmul.u32.u64.high %v1579_v63, %v1574_v51, %v3459_v59 }
 0x1e1   : > { %v1707_v20 = vsub.s32 32, %v1706_v61  ;;  %v1711_v48 = vsub.s32 4294967266, %v1706_v61  ;;  %v1721_v7 = vsub.s32 4, %v3425_v28  ;;  %v1853_v52 = vadd.s32 1, %v2108_v27 }
 0x1e2   : > { %v3467_v19 = vmul.u32.u64.low %v1579_v63, %v1578_v57  ;;  %v3468_v46 = vmul.u32.u64.high %v1579_v63, %v1578_v57, %v3467_v19  ;;  %v1708_v33 = vshll.u32 %v3438_v30, %v1706_v61  ;;  %v1570_v11 = vsel %vm1564_vm0, %v1567_v15, %v1569_v5 }
 0x1e3   : > { %v1709_v32 = vshrl.u32 %v1691_v24, %v1707_v20  ;;  %v1712_v58 = vadd.s32 127, %v1711_v48  ;;  %vm1415_vm5 = vweird.f32 %v3222_v4  ;;  %vm1418_vm6 = vcmp.lt.s32.totalorder %v3430_v12, 2 }
 0x1e4   : > { %vm3476_vm7 = vcmp.le.f32.partialorder %v1635_v43, 0.7853982  ;;  %v1589_v1 = vadd.s32 1, %v3460_v3  ;;  %vm1854_vm8 = vcmp.gt.s32.totalorder %v1853_v52, 0  ;;  %v1843_v30 = vand.u32 2147483647, %v3428_v42 }
 0x1e5   : > { %v1710_v14 = vor.u32 %v1709_v32, %v1708_v33  ;;  %v1713_v49 = vshll.u32 %v1712_v58, 23  ;;  %v1855_v8 = vsel %vm1854_vm8, %v1853_v52, 0  ;;  %vm1419_vm10 = vcmp.eq.s32.totalorder %v3430_v12, 0 }
 0x1e6   : > { %v1586_v37 = vmul.u32 %v1579_v63, %v1570_v11  ;;  %vm1588_vm9 = vc.u32 %v3468_v46, %v3459_v59  ;;  %v1857_v21 = vand.u32 31, %v1855_v8  ;;  %vm1422_vm11 = vcmp.eq.s32.totalorder %v3430_v12, 2 }
 0x1e7   : > { %v2277_v43 = vpop.eup %2276  ;;  %v1714_v39 = vor.u32 4788187, %v1713_v49  ;;  %v1722_v47 = vsel %vm1637_vm4, %v1721_v7, %v3425_v28  ;;  %v1590_v45 = vsel %vm1588_vm9, %v1589_v1, %v3460_v3  ;;  %v260_v50 = vmul.f32 %v3343_v22, %v235_v41 }
 0x1e8   : > { %v2279_v16 = vpop.eup %2278  ;;  %v1423_v25 = vxor.u32 2147483648, %v2277_v43  ;;  %v1591_v23 = vadd.s32 %v1590_v45, %v1586_v37  ;;  %v1858_v29 = vsub.s32 32, %v1857_v21  ;;  %v1717_v13 = vcvt.s32.f32 %v1710_v14 }
 0x1e9   : > { %v1420_v63 = vxor.u32 2147483648, %v2279_v16  ;;  %v1715_v55 = vand.u32 2147483647, %v1714_v39  ;;  %v1850_v6 = vand.u32 8388607, %v1843_v30  ;;  %v1724_v36 = vsel %vm3476_vm7, 0, %v1722_v47 }
 0x1ea   : > { %v1424_v54 = vsel %vm1422_vm11, %v1423_v25, %v2279_v16  ;;  %v1592_v28 = vadd.s32 536870912, %v1591_v23  ;;  %v1861_v17 = vshrl.u32 %v2364_v60, %v1858_v29  ;;  %v1856_v15 = vshrl.u32 %v1855_v8, 5 }
 0x1eb   : > { %v1421_v34 = vsel %vm1419_vm10, %v2277_v43, %v1420_v63  ;;  %v1718_v26 = vmul.f32 %v1717_v13, %v1715_v55  ;;  %v1864_v22 = vshrl.u32 %v2365_v62, %v1858_v29  ;;  %v1860_v27 = vshll.u32 %v2363_v56, %v1857_v21 }
 0x1ec   : > { %v1425_v18 = vsel %vm1418_vm6, %v1421_v34, %v1424_v54  ;;  %v3501_v35 = vshrl.u32 %v1592_v28, 30  ;;  %v1867_v5 = vshrl.u32 %v2366_v0, %v1858_v29  ;;  %v1863_v61 = vshll.u32 %v2364_v60, %v1857_v21 }
 0x1ed   : > { %v1426_v51 = vsel %vm1415_vm5, nan, %v1425_v18  ;;  %v1719_v10 = vxor.u32 2147483648, %v1718_v26  ;;  %v1866_v57 = vshll.u32 %v2365_v62, %v1857_v21  ;;  %v1862_v24 = vor.u32 %v1861_v17, %v1860_v27 }
 0x1ee   : > { %1957 = vst [vmem:[%s2729_s4 + $0x50] sm:$0xff] %v1426_v51  ;;  %v1594_v3 = vshll.u32 %v3501_v35, 30  ;;  %v1869_v12 = vshll.u32 %v2366_v0, %v1857_v21  ;;  %v1870_v20 = vshrl.u32 %v2367_v2, %v1858_v29  ;;  %v1865_v7 = vor.u32 %v1864_v22, %v1863_v61 }
 0x1ef   : > { %v1720_v48 = vsel %vm1637_vm4, %v1719_v10, %v1718_v26  ;;  %v1872_v4 = vshll.u32 %v2367_v2, %v1857_v21  ;;  %v1873_v19 = vshrl.u32 %v2368_v9, %v1858_v29  ;;  %v1868_v32 = vor.u32 %v1867_v5, %v1866_v57 }
 0x1f0   : > { %v1723_v52 = vsel %vm3476_vm7, %v3264_v44, %v1720_v48  ;;  %v1595_v33 = vsub.s32 %v1591_v23, %v1594_v3  ;;  %v1871_v58 = vor.u32 %v1870_v20, %v1869_v12  ;;  %v1851_v11 = vor.u32 8388608, %v1850_v6 }
 0x1f1   : > { %2280 = vcosq.f32 %v1723_v52  ;;  %v1874_v1 = vor.u32 %v1873_v19, %v1872_v4  ;;  %v3521_v14 = vadd.f32 %v3375_v38, %v260_v50  ;;  %vm1875_vm12 = vcmp.lt.s32.totalorder %v1856_v15, 1 }
 0x1f2   : > { %2282 = vsinq.f32 %v1723_v52  ;;  %v1597_v49 = vsub.s32 0, %v1595_v33  ;;  %vm1878_vm13 = vcmp.lt.s32.totalorder %v1856_v15, 4  ;;  %v1859_v8 = vshrl.u32 %v2363_v56, %v1858_v29 }
 0x1f3   : > { %vm1877_vm14 = vcmp.lt.s32.totalorder %v1856_v15, 3  ;;  %v1883_v41 = vsel %vm1875_vm12, %v1862_v24, %v1865_v7  ;;  %v1884_v40 = vsel %vm1878_vm13, %v1871_v58, 920167782  ;;  %vm1876_vm15 = vcmp.lt.s32.totalorder %v1856_v15, 2 }
 0x1f4   : > { %v2097_v37 = vmin.u32 %v1597_v49, %v1595_v33  ;;  %v1880_v21 = vsel %vm1878_vm13, %v1868_v32, 2102212464  ;;  %v1885_v43 = vsel %vm1877_vm14, %v1868_v32, %v1884_v40  ;;  %v1887_v47 = vsel %vm1875_vm12, %v1865_v7, %v1868_v32 }
 0x1f5   : > { %v1886_v39 = vsel %vm1876_vm15, %v1883_v41, %v1885_v43  ;;  %v1888_v38 = vsel %vm1878_vm13, %v1874_v1, 1326507024  ;;  %v1891_v45 = vshll.u32 %v1851_v11, 8  ;;  %v1728_v16 = vadd.s32 3, %v1724_v36 }
 0x1f6   : > { %v1599_v25 = vclz %v2097_v37  ;;  %v1879_v23 = vsel %vm1875_vm12, %v1859_v8, %v1862_v24  ;;  %v1881_v50 = vsel %vm1877_vm14, %v1865_v7, %v1880_v21  ;;  %v1889_v29 = vsel %vm1877_vm14, %v1871_v58, %v1888_v38 }
 0x1f7   : > { %v3528_v63 = vmul.u32.u64.low %v1891_v45, %v1886_v39  ;;  %v3529_v55 = vmul.u32.u64.high %v1891_v45, %v1886_v39, %v3528_v63  ;;  %v1890_v6 = vsel %vm1876_vm15, %v1887_v47, %v1889_v29  ;;  %v1742_v54 = vand.u32 2139095040, %v3521_v14 }
 0x1f8   : > { %v2098_v13 = vadd.s32 4294967294, %v1599_v25  ;;  %v3534_v28 = vmul.u32.u64.low %v1891_v45, %v1890_v6  ;;  %v3535_v17 = vmul.u32.u64.high %v1891_v45, %v1890_v6, %v3534_v28  ;;  %v1882_v36 = vsel %vm1876_vm15, %v1879_v23, %v1881_v50 }
 0x1f9   : > { %v1743_v34 = vshrl.u32 %v1742_v54, 23  ;;  %v1729_v26 = vand.u32 3, %v1728_v16  ;;  %v1901_v18 = vadd.s32 1, %v3529_v55  ;;  %v1587_v27 = vadd.s32 %v3459_v59, %v3468_v46 }
 0x1fa   : > { %vm2099_vm0 = vcmp.lt.s32.totalorder %v2098_v13, 0  ;;  %v1898_v57 = vmul.u32 %v1891_v45, %v1882_v36  ;;  %vm1900_vm1 = vc.u32 %v3535_v17, %v3528_v63  ;;  %v1739_v3 = vand.u32 2147483647, %v3521_v14 }
 0x1fb   : > { %v1602_v22 = vsel %vm2099_vm0, 0, %v2098_v13  ;;  %v2104_v10 = vadd.s32 4294967169, %v1743_v34  ;;  %v1902_v20 = vsel %vm1900_vm1, %v1901_v18, %v3529_v55  ;;  %vm1730_vm2 = vcmp.lt.s32.totalorder %v1729_v26, 2 }
 0x1fc   : > { %v1603_v5 = vsub.s32 32, %v1602_v22  ;;  %v1607_v51 = vsub.s32 4294967266, %v1602_v22  ;;  %v1604_v61 = vshll.u32 %v1595_v33, %v1602_v22  ;;  %vm1734_vm3 = vcmp.eq.s32.totalorder %v1729_v26, 2 }
 0x1fd   : > { %v1749_v48 = vadd.s32 1, %v2104_v10  ;;  %v1903_v46 = vadd.s32 %v1902_v20, %v1898_v57  ;;  %vm1731_vm5 = vcmp.eq.s32.totalorder %v1729_v26, 0  ;;  %v1617_v49 = vsub.s32 4, %v3501_v35 }
 0x1fe   : > { %v2281_v15 = vpop.eup %2280  ;;  %v1605_v24 = vshrl.u32 %v1587_v27, %v1603_v5  ;;  %v1608_v12 = vadd.s32 127, %v1607_v51  ;;  %v1746_v8 = vand.u32 8388607, %v1739_v3  ;;  %vm1727_vm6 = vweird.f32 %v3264_v44 }
 0x1ff   : > { %v2283_v7 = vpop.eup %2282  ;;  %v1735_v59 = vxor.u32 2147483648, %v2281_v15  ;;  %vm1750_vm4 = vcmp.gt.s32.totalorder %v1749_v48, 0  ;;  %v1904_v32 = vadd.s32 536870912, %v1903_v46  ;;  %vm1533_vm7 = vcmp.lt.s32.totalorder %v3378_v53, 0 }
 0x200   : > { %v1732_v4 = vxor.u32 2147483648, %v2283_v7  ;;  %v1606_v19 = vor.u32 %v1605_v24, %v1604_v61  ;;  %v1609_v52 = vshll.u32 %v1608_v12, 23  ;;  %v1751_v58 = vsel %vm1750_vm4, %v1749_v48, 0 }
 0x201   : > { %v1736_v33 = vsel %vm1734_vm3, %v1735_v59, %v2283_v7  ;;  %v3550_v40 = vshrl.u32 %v1904_v32, 30  ;;  %v1753_v37 = vand.u32 31, %v1751_v58  ;;  %vm3557_vm8 = vcmp.le.f32.partialorder %v1531_v31, 0.7853982 }
 0x202   : > { %v1733_v11 = vsel %vm1731_vm5, %v2281_v15, %v1732_v4  ;;  %v1610_v1 = vor.u32 4788187, %v1609_v52  ;;  %v1613_v39 = vcvt.s32.f32 %v1606_v19  ;;  %v1618_v16 = vsel %vm1533_vm7, %v1617_v49, %v3501_v35 }
 0x203   : > { %v1737_v41 = vsel %vm1730_vm2, %v1733_v11, %v1736_v33  ;;  %v1906_v47 = vshll.u32 %v3550_v40, 30  ;;  %v1754_v38 = vsub.s32 32, %v1753_v37  ;;  %v1747_v25 = vor.u32 8388608, %v1746_v8 }
 0x204   : > { %v1738_v21 = vsel %vm1727_vm6, nan, %v1737_v41  ;;  %v1611_v43 = vand.u32 2147483647, %v1610_v1  ;;  %v1752_v50 = vshrl.u32 %v1751_v58, 5  ;;  %v1756_v29 = vshll.u32 %v2363_v56, %v1753_v37 }
 0x205   : > { %1960 = vst [vmem:[%s2729_s4 + $0x68] sm:$0xff] %v1738_v21  ;;  %v1907_v23 = vsub.s32 %v1903_v46, %v1906_v47  ;;  %v1757_v55 = vshrl.u32 %v2364_v60, %v1754_v38  ;;  %v1760_v6 = vshrl.u32 %v2365_v62, %v1754_v38  ;;  %v1762_v31 = vshll.u32 %v2365_v62, %v1753_v37 }
 0x206   : > { %v1614_v44 = vmul.f32 %v1613_v39, %v1611_v43  ;;  %v1763_v54 = vshrl.u32 %v2366_v0, %v1754_v38  ;;  %v1759_v36 = vshll.u32 %v2364_v60, %v1753_v37  ;;  %v1765_v34 = vshll.u32 %v2366_v0, %v1753_v37 }
 0x207   : > { %v1909_v28 = vsub.s32 0, %v1907_v23  ;;  %v1766_v35 = vshrl.u32 %v2367_v2, %v1754_v38  ;;  %v1620_v22 = vsel %vm3557_vm8, 0, %v1618_v16  ;;  %v1758_v18 = vor.u32 %v1757_v55, %v1756_v29 }
 0x208   : > { %v1615_v13 = vxor.u32 2147483648, %v1614_v44  ;;  %v1764_v27 = vor.u32 %v1763_v54, %v1762_v31  ;;  %v1761_v51 = vor.u32 %v1760_v6, %v1759_v36  ;;  %v1768_v60 = vshll.u32 %v2367_v2, %v1753_v37 }
 0x209   : > { %v2109_v5 = vmin.u32 %v1909_v28, %v1907_v23  ;;  %v1767_v10 = vor.u32 %v1766_v35, %v1765_v34  ;;  %v1769_v0 = vshrl.u32 %v2368_v9, %v1754_v38  ;;  %v1787_v61 = vshll.u32 %v1747_v25, 8 }
 0x20a   : > { %v1616_v26 = vsel %vm1533_vm7, %v1615_v13, %v1614_v44  ;;  %vm1771_vm10 = vcmp.lt.s32.totalorder %v1752_v50, 1  ;;  %vm1774_vm9 = vcmp.lt.s32.totalorder %v1752_v50, 4  ;;  %v1755_v15 = vshrl.u32 %v2363_v56, %v1754_v38 }
 0x20b   : > { %v1619_v62 = vsel %vm3557_vm8, %v3378_v53, %v1616_v26  ;;  %v1911_v57 = vclz %v2109_v5  ;;  %v1770_v24 = vor.u32 %v1769_v0, %v1768_v60  ;;  %vm1772_vm11 = vcmp.lt.s32.totalorder %v1752_v50, 2 }
 0x20c   : > { %2284 = vcosq.f32 %v1619_v62  ;;  %v1776_v12 = vsel %vm1774_vm9, %v1764_v27, 2102212464  ;;  %vm1773_vm12 = vcmp.lt.s32.totalorder %v1752_v50, 3  ;;  %v1779_v48 = vsel %vm1771_vm10, %v1758_v18, %v1761_v51 }
 0x20d   : > { %2286 = vsinq.f32 %v1619_v62  ;;  %v2110_v20 = vadd.s32 4294967294, %v1911_v57  ;;  %v1780_v7 = vsel %vm1774_vm9, %v1767_v10, 920167782  ;;  %v1775_v59 = vsel %vm1771_vm10, %v1755_v15, %v1758_v18 }
 0x20e   : > { %v1781_v46 = vsel %vm1773_vm12, %v1764_v27, %v1780_v7  ;;  %v1783_v4 = vsel %vm1771_vm10, %v1761_v51, %v1764_v27  ;;  %v1784_v2 = vsel %vm1774_vm9, %v1770_v24, 1326507024  ;;  %v1777_v9 = vsel %vm1773_vm12, %v1761_v51, %v1776_v12 }
 0x20f   : > { %vm2111_vm13 = vcmp.lt.s32.totalorder %v2110_v20, 0  ;;  %v1782_v19 = vsel %vm1772_vm11, %v1779_v48, %v1781_v46  ;;  %v1785_v52 = vsel %vm1773_vm12, %v1767_v10, %v1784_v2  ;;  %v1624_v11 = vadd.s32 3, %v1620_v22 }
 0x210   : > { %v1914_v33 = vsel %vm2111_vm13, 0, %v2110_v20  ;;  %v1786_v32 = vsel %vm1772_vm11, %v1783_v4, %v1785_v52  ;;  %v3584_v56 = vmul.u32.u64.low %v1787_v61, %v1782_v19  ;;  %v3585_v58 = vmul.u32.u64.high %v1787_v61, %v1782_v19, %v3584_v56 }
 0x211   : > { %v1899_v1 = vadd.s32 %v3528_v63, %v3535_v17  ;;  %v1915_v49 = vsub.s32 32, %v1914_v33  ;;  %v1919_v8 = vsub.s32 4294967266, %v1914_v33  ;;  %v1916_v21 = vshll.u32 %v1907_v23, %v1914_v33 }
 0x212   : > { %v3589_v41 = vmul.u32.u64.low %v1787_v61, %v1786_v32  ;;  %v3590_v37 = vmul.u32.u64.high %v1787_v61, %v1786_v32, %v3589_v41  ;;  %v1778_v47 = vsel %vm1772_vm11, %v1775_v59, %v1777_v9  ;;  %v1797_v38 = vadd.s32 1, %v3585_v58 }
 0x213   : > { %v1917_v43 = vshrl.u32 %v1899_v1, %v1915_v49  ;;  %v1920_v39 = vadd.s32 127, %v1919_v8  ;;  %v1625_v45 = vand.u32 3, %v1624_v11  ;;  %v1794_v25 = vmul.u32 %v1787_v61, %v1778_v47 }
 0x214   : > { %vm1796_vm14 = vc.u32 %v3590_v37, %v3584_v56  ;;  %vm1623_vm2 = vweird.f32 %v3378_v53  ;;  %vm1845_vm3 = vcmp.lt.s32.totalorder %v3428_v42, 0  ;;  %v1929_v27 = vsub.s32 4, %v3550_v40 }
 0x215   : > { %v1918_v44 = vor.u32 %v1917_v43, %v1916_v21  ;;  %v1921_v16 = vshll.u32 %v1920_v39, 23  ;;  %v1798_v17 = vsel %vm1796_vm14, %v1797_v38, %v3585_v58  ;;  %vm1630_vm15 = vcmp.eq.s32.totalorder %v1625_v45, 2 }
 0x216   : > { %v1799_v6 = vadd.s32 %v1798_v17, %v1794_v25  ;;  %vm1627_vm0 = vcmp.eq.s32.totalorder %v1625_v45, 0  ;;  %vm1626_vm1 = vcmp.lt.s32.totalorder %v1625_v45, 2  ;;  %vm1844_vm4 = vcmp.le.f32.partialorder %v1843_v30, 0.7853982 }
 0x217   : > { %v1922_v63 = vor.u32 4788187, %v1921_v16  ;;  %v1925_v31 = vcvt.s32.f32 %v1918_v44  ;;  %v1930_v53 = vsel %vm1845_vm3, %v1929_v27, %v3550_v40  ;;  %v1795_v48 = vadd.s32 %v3584_v56, %v3590_v37 }
 0x218   : > { %v1800_v28 = vadd.s32 536870912, %v1799_v6  ;;  %v1932_v61 = vsel %vm1844_vm4, 0, %v1930_v53  ;;  %vm1935_vm10 = vweird.f32 %v3428_v42  ;;  %vm1741_vm9 = vcmp.lt.s32.totalorder %v3521_v14, 0 }
 0x219   : > { %v2285_v29 = vpop.eup %2284  ;;  %v1923_v50 = vand.u32 2147483647, %v1922_v63  ;;  %v1936_v15 = vadd.s32 3, %v1932_v61  ;;  %vm1740_vm11 = vcmp.le.f32.partialorder %v1739_v3, 0.7853982 }
 0x21a   : > { %v2287_v55 = vpop.eup %2286  ;;  %v1631_v13 = vxor.u32 2147483648, %v2285_v29  ;;  %v1801_v26 = vshrl.u32 %v1800_v28, 30 }
 0x21b   : > { %v1628_v23 = vxor.u32 2147483648, %v2287_v55  ;;  %v1926_v34 = vmul.f32 %v1925_v31, %v1923_v50  ;;  %v1937_v20 = vand.u32 3, %v1936_v15 }
 0x21c   : > { %v1632_v54 = vsel %vm1630_vm15, %v1631_v13, %v2287_v55  ;;  %v1802_v62 = vshll.u32 %v1801_v26, 30  ;;  %v1825_v21 = vsub.s32 4, %v1801_v26  ;;  %vm1831_vm15 = vweird.f32 %v3521_v14 }
 0x21d   : > { %v1629_v36 = vsel %vm1627_vm0, %v2285_v29, %v1628_v23  ;;  %v1927_v18 = vxor.u32 2147483648, %v1926_v34  ;;  %vm1942_vm6 = vcmp.eq.s32.totalorder %v1937_v20, 2  ;;  %vm1939_vm7 = vcmp.eq.s32.totalorder %v1937_v20, 0 }
 0x21e   : > { %v1633_v35 = vsel %vm1626_vm1, %v1629_v36, %v1632_v54  ;;  %v1803_v10 = vsub.s32 %v1799_v6, %v1802_v62  ;;  %vm1938_vm8 = vcmp.lt.s32.totalorder %v1937_v20, 2 }
 0x21f   : > { %v1634_v22 = vsel %vm1623_vm2, nan, %v1633_v35  ;;  %v1928_v5 = vsel %vm1845_vm3, %v1927_v18, %v1926_v34 }
 0x220   : > { %1959 = vst [vmem:[%s2729_s4 + $0x60] sm:$0xff] %v1634_v22  ;;  %v1931_v51 = vsel %vm1844_vm4, %v3428_v42, %v1928_v5  ;;  %v1805_v60 = vsub.s32 0, %v1803_v10  ;;  %v1826_v42 = vsel %vm1741_vm9, %v1825_v21, %v1801_v26 }
 0x221   : > { %2288 = vcosq.f32 %v1931_v51  ;;  %v1828_v47 = vsel %vm1740_vm11, 0, %v1826_v42 }
 0x222   : > { %2290 = vsinq.f32 %v1931_v51  ;;  %v2105_v0 = vmin.u32 %v1805_v60, %v1803_v10  ;;  %v1832_v38 = vadd.s32 3, %v1828_v47 }
 0x224   : > { %v1807_v57 = vclz %v2105_v0  ;;  %v1833_v45 = vand.u32 3, %v1832_v38 }
 0x226   : > { %v2106_v24 = vadd.s32 4294967294, %v1807_v57  ;;  %vm1838_vm12 = vcmp.eq.s32.totalorder %v1833_v45, 2  ;;  %vm1835_vm13 = vcmp.eq.s32.totalorder %v1833_v45, 0  ;;  %vm1834_vm14 = vcmp.lt.s32.totalorder %v1833_v45, 2 }
 0x228   : > { %vm2107_vm5 = vcmp.lt.s32.totalorder %v2106_v24, 0 }
 0x229   : > { %v1810_v12 = vsel %vm2107_vm5, 0, %v2106_v24 }
 0x22a   : > { %v1811_v30 = vsub.s32 32, %v1810_v12  ;;  %v1815_v7 = vsub.s32 4294967266, %v1810_v12  ;;  %v1812_v46 = vshll.u32 %v1803_v10, %v1810_v12 }
 0x22c   : > { %v1813_v4 = vshrl.u32 %v1795_v48, %v1811_v30  ;;  %v1816_v2 = vadd.s32 127, %v1815_v7 }
 0x22e   : > { %v2289_v59 = vpop.eup %2288  ;;  %v1814_v52 = vor.u32 %v1813_v4, %v1812_v46  ;;  %v1817_v33 = vshll.u32 %v1816_v2, 23 }
 0x22f   : > { %v2291_v9 = vpop.eup %2290  ;;  %v1943_v40 = vxor.u32 2147483648, %v2289_v59 }
 0x230   : > { %v1940_v19 = vxor.u32 2147483648, %v2291_v9  ;;  %v1818_v11 = vor.u32 4788187, %v1817_v33  ;;  %v1821_v8 = vcvt.s32.f32 %v1814_v52 }
 0x231   : > { %v1944_v32 = vsel %vm1942_vm6, %v1943_v40, %v2291_v9 }
 0x232   : > { %v1941_v58 = vsel %vm1939_vm7, %v2289_v59, %v1940_v19  ;;  %v1819_v49 = vand.u32 2147483647, %v1818_v11 }
 0x233   : > { %v1945_v56 = vsel %vm1938_vm8, %v1941_v58, %v1944_v32 }
 0x234   : > { %v1946_v1 = vsel %vm1935_vm10, nan, %v1945_v56  ;;  %v1822_v41 = vmul.f32 %v1821_v8, %v1819_v49 }
 0x235   : > { %1962 = vst [vmem:[%s2729_s4 + $0x78] sm:$0xff] %v1946_v1 }
 0x236   : > { %v1823_v37 = vxor.u32 2147483648, %v1822_v41 }
 0x238   : > { %v1824_v43 = vsel %vm1741_vm9, %v1823_v37, %v1822_v41 }
 0x239   : > { %v1827_v39 = vsel %vm1740_vm11, %v3521_v14, %v1824_v43 }
 0x23a   : > { %2292 = vcosq.f32 %v1827_v39 }
 0x23b   : > { %2294 = vsinq.f32 %v1827_v39 }
 0x247   : > { %v2293_v44 = vpop.eup %2292 }
 0x248   : > { %v2295_v16 = vpop.eup %2294  ;;  %v1839_v25 = vxor.u32 2147483648, %v2293_v44 }
 0x249   : > { %v1836_v29 = vxor.u32 2147483648, %v2295_v16 }
 0x24a   : > { %v1840_v3 = vsel %vm1838_vm12, %v1839_v25, %v2295_v16 }
 0x24b   : > { %v1837_v63 = vsel %vm1835_vm13, %v2293_v44, %v1836_v29 }
 0x24c   : > { %v1841_v17 = vsel %vm1834_vm14, %v1837_v63, %v1840_v3 }
 0x24d   : > { %v1842_v55 = vsel %vm1831_vm15, nan, %v1841_v17 }
 0x24e   : > { %1961 = vst [vmem:[%s2729_s4 + $0x70] sm:$0xff] %v1842_v55 }
 0x24f   : > { %2313 = shalt.err (!%p2310_p3)
}
 0x250   : > { %s2314_s30 = scalar_lea.hbm %s3616_s26, 2048  ;;  %s2318_s6 = scalar_lea.hbm %s3666_s2, 4096 }
 0x251   : > { %p2315_p4 = scmp.ne.s32.totalorder %s3616_s26, %s2314_s30  ;;  %p2319_p9 = scmp.lt.s32.totalorder %s3616_s26, %s3666_s2 }
 0x252   : > { %p2320_p10 = scmp.lt.s32.totalorder %s2318_s6, %s2314_s30 }
 0x253   : > { %p2316_p7 = pnand %p2315_p4, %p2425_p5 }
 0x254   : > { %p2321_p11 = por %p2320_p10, %p2319_p9 }
 0x255   : > { %p2317_p8 = pneg %p2316_p7 }
 0x257   : > { %p2322_p12 = pnand %p2321_p11, %p2317_p8 }
 0x259   : > { %2325 = shalt.err (!%p2322_p12)
}
 0x25a   : > { %s2370_s14 = smov 128   ;;  %s2371_s16 = smov 8  }
 0x25b   : > { %2182 = dma.vmem_to_hbm [thread:$0]  (%p2425_p5), %s3618_s23, 2048, %s3616_s26, %s3624_s13, %s2370_s14, %s2370_s14, %s2371_s16  }
 0x25c PF: > { %p2188_p13 = scmp.ge.s32.totalorder %s2360_s12, 2  ;;  %s1992_s17 = sand.u32 1, %s2348_s9  }
 0x25d   : > { %s1993_s21 = scalar_lea.sflag [#allocation3], %s1992_s17 }
 0x25e   : > { %p2185_p0 = pnand %p2188_p13, %p2429_p6 }
 0x260   : > { %p2186_p1 = pneg %p2185_p0 }
 0x262   : > { %2343 = dma.done.wait (%p2186_p1), %s1993_s21, 2048  }
 0x263   : > { %2345 = vsyncadd (%p2186_p1), %s1993_s21, 4294965248  ;;  %p12_p2 = scmp.ge.s32.totalorder %s2412_s15, 4   ;;  %s3697_s9 = smov %s2352_s10 }
 0x264   : > { %s3698_s10 = smov %s2356_s11  ;;  %s3699_s11 = smov %s2423_s18 }
 0x265   : > { %s3700_s12 = smov %s2412_s15  ;;  %14 = sbr.rel (!%p12_p2) target bundleno = 3 (0x3), region = 63 }
 0x26a   :  { %1998 = vsyncpa [#allocation3], 1 }
 0x26b   :  { %2000 = vsyncpa [#allocation3 + $0x1], 1 }

</bundles_post_ra>
